<compile_context>
chip_gen: v5e
topology: v5e:2x2
jax: 0.10.0
libtpu: 0.0.40
codegen_flags: <defaults>
</compile_context>

<pallas_src>
import math
import functools

import jax
import jax.numpy as jnp
from jax.experimental import pallas as pl
from jax.experimental.pallas import tpu as pltpu


def _round_up(x, m):
    return (x + m - 1) // m * m


# ------------------------------ Pallas kernel -------------------------------- #
def _transformer_block_kernel(
    x_ref, wqkv_ref, bqkv_ref, wo_ref, bo_ref,
    n1w_ref, n1b_ref, w1_ref, b1_ref, w2_ref, b2_ref,
    n2w_ref, n2b_ref, o_ref, *, num_heads, d_k, eps,
):
    f32 = jnp.float32
    x = x_ref[...]                                   # (tm, D) f32
    tm, d_model = x.shape

    w_qkv = wqkv_ref[...]
    cdt = w_qkv.dtype                                # compute dtype of weights (bf16)

    # ---- qkv projection (MXU, f32 accumulation) ------------------------------
    qkv = jnp.dot(x.astype(cdt), w_qkv, preferred_element_type=f32) + bqkv_ref[...]
    # Columns were pre-permuted to [Q | K | V] (each D wide, head-major), so these
    # slices are contiguous, lane-aligned views.
    scale = 1.0 / math.sqrt(d_k)
    q = qkv[:, :d_model].reshape(tm, num_heads, d_k) * scale
    k = qkv[:, d_model:2 * d_model].reshape(tm, num_heads, d_k)
    v = qkv[:, 2 * d_model:].reshape(tm, num_heads, d_k)

    # ---- per-token head-mixing attention (batched contractions) --------------
    # scores[t, h, g] = <q[t, h, :], k[t, g, :]>         == einsum('thd,tgd->thg')
    scores = jax.lax.dot_general(
        q, k, (((2,), (2,)), ((0,), (0,))), preferred_element_type=f32)
    scores = scores - jnp.max(scores, axis=-1, keepdims=True)
    p = jnp.exp(scores)
    attn = p * pl.reciprocal(jnp.sum(p, axis=-1, keepdims=True), approx=True)
    # context[t, h, d] = sum_g attn[t, h, g] * v[t, g, d] == einsum('thg,tgd->thd')
    context = jax.lax.dot_general(
        attn, v, (((2,), (1,)), ((0,), (0,))), preferred_element_type=f32)
    context = context.reshape(tm, d_model)

    attn_out = jnp.dot(context.astype(cdt), wo_ref[...],
                       preferred_element_type=f32) + bo_ref[...]

    # ---- residual + LayerNorm 1 (f32) -----------------------------------------
    h1 = x + attn_out
    mu1 = jnp.mean(h1, axis=-1, keepdims=True)
    var1 = jnp.mean((h1 - mu1) ** 2, axis=-1, keepdims=True)
    y = (h1 - mu1) * jax.lax.rsqrt(var1 + eps) * n1w_ref[...] + n1b_ref[...]

    # ---- feed-forward ----------------------------------------------------------
    ff = jnp.dot(y.astype(cdt), w1_ref[...], preferred_element_type=f32) + b1_ref[...]
    ff = jnp.maximum(ff, 0.0)
    ff = jnp.dot(ff.astype(cdt), w2_ref[...], preferred_element_type=f32) + b2_ref[...]

    # ---- residual + LayerNorm 2 (f32) -----------------------------------------
    h2 = y + ff
    mu2 = jnp.mean(h2, axis=-1, keepdims=True)
    var2 = jnp.mean((h2 - mu2) ** 2, axis=-1, keepdims=True)
    o_ref[...] = (h2 - mu2) * jax.lax.rsqrt(var2 + eps) * n2w_ref[...] + n2b_ref[...]


# ------------------------- one-time parameter prep ---------------------------- #
def prepare_params(params, *, num_heads, weight_dtype=jnp.bfloat16):
    """Transpose linear weights to (in, out), permute the qkv output columns so
    q/k/v are contiguous D-wide head-major blocks, and cast matrices to
    `weight_dtype`.  Do this ONCE (outside the hot path)."""
    D = params["wo"].shape[0]
    F = params["w1"].shape[0]
    d_k = D // num_heads
    f32 = jnp.float32
    # new column s*D + h*d_k + d  <-  old column h*3*d_k + s*d_k + d   (s in {q,k,v})
    perm = jnp.arange(3 * D).reshape(num_heads, 3, d_k).transpose(1, 0, 2).reshape(3 * D)
    return {
        "wqkv": params["wqkv"].T[:, perm].astype(weight_dtype),   # (D, 3D)
        "bqkv": params["bqkv"][perm].reshape(1, 3 * D).astype(f32),
        "wo":   params["wo"].T.astype(weight_dtype),              # (D, D)
        "bo":   params["bo"].reshape(1, D).astype(f32),
        "w1":   params["w1"].T.astype(weight_dtype),              # (D, F)
        "b1":   params["b1"].reshape(1, F).astype(f32),
        "w2":   params["w2"].T.astype(weight_dtype),              # (F, D)
        "b2":   params["b2"].reshape(1, D).astype(f32),
        "n1w":  params["n1w"].reshape(1, D).astype(f32),
        "n1b":  params["n1b"].reshape(1, D).astype(f32),
        "n2w":  params["n2w"].reshape(1, D).astype(f32),
        "n2b":  params["n2b"].reshape(1, D).astype(f32),
    }


# ---------------------------------- wrapper ----------------------------------- #
def transformer_block(x, prepped, *, num_heads, tm=256, eps=1e-5, vmem_limit_bytes=None):
    """x: (B, S, D) float32.  prepped: output of prepare_params()."""
    B, S, D = x.shape
    assert D % num_heads == 0
    d_k = D // num_heads
    F = prepped["w1"].shape[1]
    N = B * S

    # Row tile: as large as possible (multiple of 8 sublanes for f32), pad N up to
    # a tile multiple.  For production shapes prefer tm a multiple of the MXU M dim
    # (128 on v5e, 256 on v6e/v7x) and keep N // tm even on v7x (2 TensorCores).
    tm = min(tm, _round_up(N, 8))
    N_pad = _round_up(N, tm)
    grid = N_pad // tm

    x2 = x.reshape(N, D).astype(jnp.float32)
    if N_pad != N:
        x2 = jnp.pad(x2, ((0, N_pad - N), (0, 0)))   # zero rows are LayerNorm-safe

    ins = (
        x2,
        prepped["wqkv"], prepped["bqkv"],
        prepped["wo"], prepped["bo"],
        prepped["n1w"], prepped["n1b"],
        prepped["w1"], prepped["b1"],
        prepped["w2"], prepped["b2"],
        prepped["n2w"], prepped["n2b"],
    )

    def full(a):   # whole-array (resident) parameter block
        return pl.BlockSpec(a.shape, lambda i: (0, 0))

    in_specs = [pl.BlockSpec((tm, D), lambda i: (i, 0))] + [full(a) for a in ins[1:]]

    param_bytes = sum(int(a.size) * a.dtype.itemsize for a in ins[1:])
    if vmem_limit_bytes is None:
        # tiles (double-buffered in + out) + params (double-buffered by default) + headroom.
        # v5e/v6e scoped defaults are 16/32 MiB; keep well under 64 MiB for v7x.
        est = 4 * tm * D * 4 + 2 * param_bytes + (16 << 20)
        vmem_limit_bytes = min(max(est, 32 << 20), 60 << 20)

    flops = 2 * N_pad * (3 * D * D + D * D + 2 * D * F + 2 * num_heads * num_heads * d_k)
    transcendentals = N_pad * (num_heads * num_heads + num_heads + 2)
    bytes_accessed = 2 * N_pad * D * 4 + param_bytes
    cost = pl.CostEstimate(flops=flops, transcendentals=transcendentals,
                           bytes_accessed=bytes_accessed)

    kernel = functools.partial(_transformer_block_kernel,
                               num_heads=num_heads, d_k=d_k, eps=eps)

    out = pl.pallas_call(
        kernel,
        out_shape=jax.ShapeDtypeStruct((N_pad, D), jnp.float32),
        grid_spec=pltpu.PrefetchScalarGridSpec(
            num_scalar_prefetch=0,
            grid=(grid,),
            in_specs=in_specs,
            out_specs=pl.BlockSpec((tm, D), lambda i: (i, 0)),
        ),
        compiler_params=pltpu.CompilerParams(
            dimension_semantics=("parallel",),
            vmem_limit_bytes=int(vmem_limit_bytes),
        ),
        cost_estimate=cost,
    )(*ins)
    return out[:N].reshape(B, S, D)


# ----------------------------- pure-JAX reference ------------------------------ #
def _layernorm(x, w, b, eps=1e-5):
    mu = jnp.mean(x, axis=-1, keepdims=True)
    var = jnp.mean((x - mu) ** 2, axis=-1, keepdims=True)
    return (x - mu) * jax.lax.rsqrt(var + eps) * w + b


def transformer_block_ref(x, p, *, num_heads, eps=1e-5):
    B, S, D = x.shape
    d_k = D // num_heads
    qkv = x @ p["wqkv"].T + p["bqkv"]
    qkv = qkv.reshape(B, S, num_heads, 3 * d_k)
    q, k, v = qkv[..., :d_k], qkv[..., d_k:2 * d_k], qkv[..., 2 * d_k:]
    scores = jnp.einsum("bshd,bsgd->bshg", q, k) / math.sqrt(d_k)
    attn = jax.nn.softmax(scores, axis=-1)
    ctx = jnp.einsum("bshg,bsgd->bshd", attn, v).reshape(B, S, D)
    attn_out = ctx @ p["wo"].T + p["bo"]
    y = _layernorm(x + attn_out, p["n1w"], p["n1b"], eps)
    ff = jnp.maximum(y @ p["w1"].T + p["b1"], 0.0) @ p["w2"].T + p["b2"]
    return _layernorm(y + ff, p["n2w"], p["n2b"], eps)


# ------------------------------------ main ------------------------------------- #
if __name__ == "__main__":
    B, S, D, H, F = 2, 8, 32, 4, 64   # batch, seq, d_model, num_heads, dim_feedforward

    ks = jax.random.split(jax.random.PRNGKey(0), 9)
    params = {
        "wqkv": 0.1 * jax.random.normal(ks[0], (3 * D, D), jnp.float32),
        "bqkv": 0.1 * jax.random.normal(ks[1], (3 * D,), jnp.float32),
        "wo":   0.1 * jax.random.normal(ks[2], (D, D), jnp.float32),
        "bo":   0.1 * jax.random.normal(ks[3], (D,), jnp.float32),
        "w1":   0.1 * jax.random.normal(ks[4], (F, D), jnp.float32),
        "b1":   0.1 * jax.random.normal(ks[5], (F,), jnp.float32),
        "w2":   0.1 * jax.random.normal(ks[6], (D, F), jnp.float32),
        "b2":   0.1 * jax.random.normal(ks[7], (D,), jnp.float32),
        "n1w":  jnp.ones((D,), jnp.float32),
        "n1b":  jnp.zeros((D,), jnp.float32),
        "n2w":  jnp.ones((D,), jnp.float32),
        "n2b":  jnp.zeros((D,), jnp.float32),
    }
    x = jax.random.normal(ks[8], (B, S, D), jnp.float32)

    prepped = prepare_params(params, num_heads=H, weight_dtype=jnp.bfloat16)

    out = transformer_block(x, prepped, num_heads=H)
    out = jax.block_until_ready(out)

    ref = transformer_block_ref(x, params, num_heads=H)
    assert out.shape == (B, S, D)
    max_err = float(jnp.max(jnp.abs(out - ref)))
    # Tolerance accounts for bf16 weights / matmul inputs (f32 accumulation) vs f32 ref.
    assert jnp.allclose(out, ref, atol=5e-2, rtol=5e-2), max_err

    print("KERNEL_OK")
</pallas_src>

<mosaic_0001>
module attributes {stable_mosaic.version = 11 : i64} {
  func.func @_transformer_block_kernel(%arg0: i32, %arg1: memref<16x32xf32, #tpu.memory_space<vmem>>, %arg2: memref<32x96xbf16, #tpu.memory_space<vmem>>, %arg3: memref<1x96xf32, #tpu.memory_space<vmem>>, %arg4: memref<32x32xbf16, #tpu.memory_space<vmem>>, %arg5: memref<1x32xf32, #tpu.memory_space<vmem>>, %arg6: memref<1x32xf32, #tpu.memory_space<vmem>>, %arg7: memref<1x32xf32, #tpu.memory_space<vmem>>, %arg8: memref<32x64xbf16, #tpu.memory_space<vmem>>, %arg9: memref<1x64xf32, #tpu.memory_space<vmem>>, %arg10: memref<64x32xbf16, #tpu.memory_space<vmem>>, %arg11: memref<1x32xf32, #tpu.memory_space<vmem>>, %arg12: memref<1x32xf32, #tpu.memory_space<vmem>>, %arg13: memref<1x32xf32, #tpu.memory_space<vmem>>, %arg14: memref<16x32xf32, #tpu.memory_space<vmem>>) attributes {dimension_semantics = [#tpu.dimension_semantics<parallel>], iteration_bounds = array<i64: 1>, scalar_prefetch = 0 : i64, scratch_operands = 0 : i64, tpu.core_type = #tpu.core_type<tc>, window_params = [{transform_indices = @transform_0, window_bounds = array<i64: 16, 32>}, {pipeline_mode = #tpu.pipeline_mode<synchronous>, transform_indices = @transform_1, window_bounds = array<i64: 32, 96>}, {pipeline_mode = #tpu.pipeline_mode<synchronous>, transform_indices = @transform_2, window_bounds = array<i64: 1, 96>}, {pipeline_mode = #tpu.pipeline_mode<synchronous>, transform_indices = @transform_3, window_bounds = array<i64: 32, 32>}, {pipeline_mode = #tpu.pipeline_mode<synchronous>, transform_indices = @transform_4, window_bounds = array<i64: 1, 32>}, {pipeline_mode = #tpu.pipeline_mode<synchronous>, transform_indices = @transform_5, window_bounds = array<i64: 1, 32>}, {pipeline_mode = #tpu.pipeline_mode<synchronous>, transform_indices = @transform_6, window_bounds = array<i64: 1, 32>}, {pipeline_mode = #tpu.pipeline_mode<synchronous>, transform_indices = @transform_7, window_bounds = array<i64: 32, 64>}, {pipeline_mode = #tpu.pipeline_mode<synchronous>, transform_indices = @transform_8, window_bounds = array<i64: 1, 64>}, {pipeline_mode = #tpu.pipeline_mode<synchronous>, transform_indices = @transform_9, window_bounds = array<i64: 64, 32>}, {pipeline_mode = #tpu.pipeline_mode<synchronous>, transform_indices = @transform_10, window_bounds = array<i64: 1, 32>}, {pipeline_mode = #tpu.pipeline_mode<synchronous>, transform_indices = @transform_11, window_bounds = array<i64: 1, 32>}, {pipeline_mode = #tpu.pipeline_mode<synchronous>, transform_indices = @transform_12, window_bounds = array<i64: 1, 32>}, {transform_indices = @transform_13, window_bounds = array<i64: 16, 32>}]} {
    %c0 = arith.constant 0 : index
    %c0_0 = arith.constant 0 : index
    %0 = vector.load %arg1[%c0, %c0_0] : memref<16x32xf32, #tpu.memory_space<vmem>>, vector<16x32xf32>
    %c0_1 = arith.constant 0 : index
    %c0_2 = arith.constant 0 : index
    %1 = vector.load %arg2[%c0_1, %c0_2] : memref<32x96xbf16, #tpu.memory_space<vmem>>, vector<32x96xbf16>
    %2 = arith.truncf %0 : vector<16x32xf32> to vector<16x32xbf16>
    %cst = arith.constant dense<0.000000e+00> : vector<16x96xf32>
    %3 = tpu.matmul %2, %1, %cst {dimension_numbers = #tpu.dot_dimension_numbers<[1], [0], [0], [1], [0, 0, 1, 1], [], []>} : vector<16x32xbf16>, vector<32x96xbf16>, vector<16x96xf32> -> vector<16x96xf32>
    %c0_3 = arith.constant 0 : index
    %c0_4 = arith.constant 0 : index
    %4 = vector.load %arg3[%c0_3, %c0_4] : memref<1x96xf32, #tpu.memory_space<vmem>>, vector<1x96xf32>
    %5 = vector.broadcast %4 : vector<1x96xf32> to vector<16x96xf32>
    %6 = arith.addf %3, %5 : vector<16x96xf32>
    %7 = vector.extract_strided_slice %6 {offsets = [0, 0], sizes = [16, 32], strides = [1, 1]} : vector<16x96xf32> to vector<16x32xf32>
    %8 = vector.shape_cast %7 : vector<16x32xf32> to vector<16x4x8xf32>
    %cst_5 = arith.constant 0.353553385 : f32
    %9 = vector.broadcast %cst_5 : f32 to vector<16x4x8xf32>
    %10 = arith.mulf %8, %9 : vector<16x4x8xf32>
    %11 = vector.extract_strided_slice %6 {offsets = [0, 32], sizes = [16, 32], strides = [1, 1]} : vector<16x96xf32> to vector<16x32xf32>
    %12 = vector.shape_cast %11 : vector<16x32xf32> to vector<16x4x8xf32>
    %13 = vector.extract_strided_slice %6 {offsets = [0, 64], sizes = [16, 32], strides = [1, 1]} : vector<16x96xf32> to vector<16x32xf32>
    %14 = vector.shape_cast %13 : vector<16x32xf32> to vector<16x4x8xf32>
    %cst_6 = arith.constant dense<0.000000e+00> : vector<16x4x4xf32>
    %15 = tpu.matmul %10, %12, %cst_6 {dimension_numbers = #tpu.dot_dimension_numbers<[2], [2], [1], [1], [0, 0, 0, 1, 1, 1], [0], [0]>} : vector<16x4x8xf32>, vector<16x4x8xf32>, vector<16x4x4xf32> -> vector<16x4x4xf32>
    %cst_7 = arith.constant dense<0xFF800000> : vector<16x4xf32>
    %16 = vector.multi_reduction <maximumf>, %15, %cst_7 [2] : vector<16x4x4xf32> to vector<16x4xf32>
    %17 = vector.shape_cast %16 : vector<16x4xf32> to vector<16x4x1xf32>
    %18 = vector.broadcast %17 : vector<16x4x1xf32> to vector<16x4x4xf32>
    %19 = arith.subf %15, %18 : vector<16x4x4xf32>
    %20 = math.exp %19 : vector<16x4x4xf32>
    %cst_8 = arith.constant dense<0.000000e+00> : vector<16x4xf32>
    %21 = vector.multi_reduction <add>, %20, %cst_8 [2] : vector<16x4x4xf32> to vector<16x4xf32>
    %22 = vector.shape_cast %21 : vector<16x4xf32> to vector<16x4x1xf32>
    %23 = tpu.reciprocal %22 {approx = true} : vector<16x4x1xf32> -> vector<16x4x1xf32>
    %24 = vector.broadcast %23 : vector<16x4x1xf32> to vector<16x4x4xf32>
    %25 = arith.mulf %20, %24 : vector<16x4x4xf32>
    %cst_9 = arith.constant dense<0.000000e+00> : vector<16x4x8xf32>
    %26 = tpu.matmul %25, %14, %cst_9 {dimension_numbers = #tpu.dot_dimension_numbers<[2], [1], [1], [2], [0, 0, 0, 1, 1, 2], [0], [0]>} : vector<16x4x4xf32>, vector<16x4x8xf32>, vector<16x4x8xf32> -> vector<16x4x8xf32>
    %27 = vector.shape_cast %26 : vector<16x4x8xf32> to vector<16x32xf32>
    %28 = arith.truncf %27 : vector<16x32xf32> to vector<16x32xbf16>
    %c0_10 = arith.constant 0 : index
    %c0_11 = arith.constant 0 : index
    %29 = vector.load %arg4[%c0_10, %c0_11] : memref<32x32xbf16, #tpu.memory_space<vmem>>, vector<32x32xbf16>
    %cst_12 = arith.constant dense<0.000000e+00> : vector<16x32xf32>
    %30 = tpu.matmul %28, %29, %cst_12 {dimension_numbers = #tpu.dot_dimension_numbers<[1], [0], [0], [1], [0, 0, 1, 1], [], []>} : vector<16x32xbf16>, vector<32x32xbf16>, vector<16x32xf32> -> vector<16x32xf32>
    %c0_13 = arith.constant 0 : index
    %c0_14 = arith.constant 0 : index
    %31 = vector.load %arg5[%c0_13, %c0_14] : memref<1x32xf32, #tpu.memory_space<vmem>>, vector<1x32xf32>
    %32 = vector.broadcast %31 : vector<1x32xf32> to vector<16x32xf32>
    %33 = arith.addf %30, %32 : vector<16x32xf32>
    %34 = arith.addf %0, %33 : vector<16x32xf32>
    %cst_15 = arith.constant dense<0.000000e+00> : vector<16xf32>
    %35 = vector.multi_reduction <add>, %34, %cst_15 [1] : vector<16x32xf32> to vector<16xf32>
    %36 = vector.shape_cast %35 : vector<16xf32> to vector<16x1xf32>
    %cst_16 = arith.constant 3.200000e+01 : f32
    %37 = vector.broadcast %cst_16 : f32 to vector<16x1xf32>
    %38 = arith.divf %36, %37 : vector<16x1xf32>
    %39 = vector.broadcast %38 : vector<16x1xf32> to vector<16x32xf32>
    %40 = arith.subf %34, %39 : vector<16x32xf32>
    %41 = arith.mulf %40, %40 : vector<16x32xf32>
    %cst_17 = arith.constant dense<0.000000e+00> : vector<16xf32>
    %42 = vector.multi_reduction <add>, %41, %cst_17 [1] : vector<16x32xf32> to vector<16xf32>
    %43 = vector.shape_cast %42 : vector<16xf32> to vector<16x1xf32>
    %cst_18 = arith.constant 3.200000e+01 : f32
    %44 = vector.broadcast %cst_18 : f32 to vector<16x1xf32>
    %45 = arith.divf %43, %44 : vector<16x1xf32>
    %46 = vector.broadcast %38 : vector<16x1xf32> to vector<16x32xf32>
    %47 = arith.subf %34, %46 : vector<16x32xf32>
    %cst_19 = arith.constant 9.99999974E-6 : f32
    %48 = vector.broadcast %cst_19 : f32 to vector<16x1xf32>
    %49 = arith.addf %45, %48 : vector<16x1xf32>
    %50 = math.rsqrt %49 : vector<16x1xf32>
    %51 = vector.broadcast %50 : vector<16x1xf32> to vector<16x32xf32>
    %52 = arith.mulf %47, %51 : vector<16x32xf32>
    %c0_20 = arith.constant 0 : index
    %c0_21 = arith.constant 0 : index
    %53 = vector.load %arg6[%c0_20, %c0_21] : memref<1x32xf32, #tpu.memory_space<vmem>>, vector<1x32xf32>
    %54 = vector.broadcast %53 : vector<1x32xf32> to vector<16x32xf32>
    %55 = arith.mulf %52, %54 : vector<16x32xf32>
    %c0_22 = arith.constant 0 : index
    %c0_23 = arith.constant 0 : index
    %56 = vector.load %arg7[%c0_22, %c0_23] : memref<1x32xf32, #tpu.memory_space<vmem>>, vector<1x32xf32>
    %57 = vector.broadcast %56 : vector<1x32xf32> to vector<16x32xf32>
    %58 = arith.addf %55, %57 : vector<16x32xf32>
    %59 = arith.truncf %58 : vector<16x32xf32> to vector<16x32xbf16>
    %c0_24 = arith.constant 0 : index
    %c0_25 = arith.constant 0 : index
    %60 = vector.load %arg8[%c0_24, %c0_25] : memref<32x64xbf16, #tpu.memory_space<vmem>>, vector<32x64xbf16>
    %cst_26 = arith.constant dense<0.000000e+00> : vector<16x64xf32>
    %61 = tpu.matmul %59, %60, %cst_26 {dimension_numbers = #tpu.dot_dimension_numbers<[1], [0], [0], [1], [0, 0, 1, 1], [], []>} : vector<16x32xbf16>, vector<32x64xbf16>, vector<16x64xf32> -> vector<16x64xf32>
    %c0_27 = arith.constant 0 : index
    %c0_28 = arith.constant 0 : index
    %62 = vector.load %arg9[%c0_27, %c0_28] : memref<1x64xf32, #tpu.memory_space<vmem>>, vector<1x64xf32>
    %63 = vector.broadcast %62 : vector<1x64xf32> to vector<16x64xf32>
    %64 = arith.addf %61, %63 : vector<16x64xf32>
    %cst_29 = arith.constant 0.000000e+00 : f32
    %65 = vector.broadcast %cst_29 : f32 to vector<16x64xf32>
    %66 = arith.maximumf %64, %65 : vector<16x64xf32>
    %67 = arith.truncf %66 : vector<16x64xf32> to vector<16x64xbf16>
    %c0_30 = arith.constant 0 : index
    %c0_31 = arith.constant 0 : index
    %68 = vector.load %arg10[%c0_30, %c0_31] : memref<64x32xbf16, #tpu.memory_space<vmem>>, vector<64x32xbf16>
    %cst_32 = arith.constant dense<0.000000e+00> : vector<16x32xf32>
    %69 = tpu.matmul %67, %68, %cst_32 {dimension_numbers = #tpu.dot_dimension_numbers<[1], [0], [0], [1], [0, 0, 1, 1], [], []>} : vector<16x64xbf16>, vector<64x32xbf16>, vector<16x32xf32> -> vector<16x32xf32>
    %c0_33 = arith.constant 0 : index
    %c0_34 = arith.constant 0 : index
    %70 = vector.load %arg11[%c0_33, %c0_34] : memref<1x32xf32, #tpu.memory_space<vmem>>, vector<1x32xf32>
    %71 = vector.broadcast %70 : vector<1x32xf32> to vector<16x32xf32>
    %72 = arith.addf %69, %71 : vector<16x32xf32>
    %73 = arith.addf %58, %72 : vector<16x32xf32>
    %cst_35 = arith.constant dense<0.000000e+00> : vector<16xf32>
    %74 = vector.multi_reduction <add>, %73, %cst_35 [1] : vector<16x32xf32> to vector<16xf32>
    %75 = vector.shape_cast %74 : vector<16xf32> to vector<16x1xf32>
    %cst_36 = arith.constant 3.200000e+01 : f32
    %76 = vector.broadcast %cst_36 : f32 to vector<16x1xf32>
    %77 = arith.divf %75, %76 : vector<16x1xf32>
    %78 = vector.broadcast %77 : vector<16x1xf32> to vector<16x32xf32>
    %79 = arith.subf %73, %78 : vector<16x32xf32>
    %80 = arith.mulf %79, %79 : vector<16x32xf32>
    %cst_37 = arith.constant dense<0.000000e+00> : vector<16xf32>
    %81 = vector.multi_reduction <add>, %80, %cst_37 [1] : vector<16x32xf32> to vector<16xf32>
    %82 = vector.shape_cast %81 : vector<16xf32> to vector<16x1xf32>
    %cst_38 = arith.constant 3.200000e+01 : f32
    %83 = vector.broadcast %cst_38 : f32 to vector<16x1xf32>
    %84 = arith.divf %82, %83 : vector<16x1xf32>
    %85 = vector.broadcast %77 : vector<16x1xf32> to vector<16x32xf32>
    %86 = arith.subf %73, %85 : vector<16x32xf32>
    %cst_39 = arith.constant 9.99999974E-6 : f32
    %87 = vector.broadcast %cst_39 : f32 to vector<16x1xf32>
    %88 = arith.addf %84, %87 : vector<16x1xf32>
    %89 = math.rsqrt %88 : vector<16x1xf32>
    %90 = vector.broadcast %89 : vector<16x1xf32> to vector<16x32xf32>
    %91 = arith.mulf %86, %90 : vector<16x32xf32>
    %c0_40 = arith.constant 0 : index
    %c0_41 = arith.constant 0 : index
    %92 = vector.load %arg12[%c0_40, %c0_41] : memref<1x32xf32, #tpu.memory_space<vmem>>, vector<1x32xf32>
    %93 = vector.broadcast %92 : vector<1x32xf32> to vector<16x32xf32>
    %94 = arith.mulf %91, %93 : vector<16x32xf32>
    %c0_42 = arith.constant 0 : index
    %c0_43 = arith.constant 0 : index
    %95 = vector.load %arg13[%c0_42, %c0_43] : memref<1x32xf32, #tpu.memory_space<vmem>>, vector<1x32xf32>
    %96 = vector.broadcast %95 : vector<1x32xf32> to vector<16x32xf32>
    %97 = arith.addf %94, %96 : vector<16x32xf32>
    %c0_44 = arith.constant 0 : index
    %c0_45 = arith.constant 0 : index
    %98 = vector.load %arg14[%c0_44, %c0_45] : memref<16x32xf32, #tpu.memory_space<vmem>>, vector<16x32xf32>
    tpu.vector_store %arg14[%c0_44, %c0_45], %97 {strides = array<i32>} : memref<16x32xf32, #tpu.memory_space<vmem>>, vector<16x32xf32>,
    return
  }
  func.func @transform_0(%arg0: i32) -> (i32, i32) {
    %c0_i32 = arith.constant 0 : i32
    %c0_i32_0 = arith.constant 0 : i32
    return %arg0, %c0_i32 : i32, i32
  }
  func.func @transform_1(%arg0: i32) -> (i32, i32) {
    %c0_i32 = arith.constant 0 : i32
    %c0_i32_0 = arith.constant 0 : i32
    %c0_i32_1 = arith.constant 0 : i32
    return %c0_i32, %c0_i32_0 : i32, i32
  }
  func.func @transform_2(%arg0: i32) -> (i32, i32) {
    %c0_i32 = arith.constant 0 : i32
    %c0_i32_0 = arith.constant 0 : i32
    %c0_i32_1 = arith.constant 0 : i32
    return %c0_i32, %c0_i32_0 : i32, i32
  }
  func.func @transform_3(%arg0: i32) -> (i32, i32) {
    %c0_i32 = arith.constant 0 : i32
    %c0_i32_0 = arith.constant 0 : i32
    %c0_i32_1 = arith.constant 0 : i32
    return %c0_i32, %c0_i32_0 : i32, i32
  }
  func.func @transform_4(%arg0: i32) -> (i32, i32) {
    %c0_i32 = arith.constant 0 : i32
    %c0_i32_0 = arith.constant 0 : i32
    %c0_i32_1 = arith.constant 0 : i32
    return %c0_i32, %c0_i32_0 : i32, i32
  }
  func.func @transform_5(%arg0: i32) -> (i32, i32) {
    %c0_i32 = arith.constant 0 : i32
    %c0_i32_0 = arith.constant 0 : i32
    %c0_i32_1 = arith.constant 0 : i32
    return %c0_i32, %c0_i32_0 : i32, i32
  }
  func.func @transform_6(%arg0: i32) -> (i32, i32) {
    %c0_i32 = arith.constant 0 : i32
    %c0_i32_0 = arith.constant 0 : i32
    %c0_i32_1 = arith.constant 0 : i32
    return %c0_i32, %c0_i32_0 : i32, i32
  }
  func.func @transform_7(%arg0: i32) -> (i32, i32) {
    %c0_i32 = arith.constant 0 : i32
    %c0_i32_0 = arith.constant 0 : i32
    %c0_i32_1 = arith.constant 0 : i32
    return %c0_i32, %c0_i32_0 : i32, i32
  }
  func.func @transform_8(%arg0: i32) -> (i32, i32) {
    %c0_i32 = arith.constant 0 : i32
    %c0_i32_0 = arith.constant 0 : i32
    %c0_i32_1 = arith.constant 0 : i32
    return %c0_i32, %c0_i32_0 : i32, i32
  }
  func.func @transform_9(%arg0: i32) -> (i32, i32) {
    %c0_i32 = arith.constant 0 : i32
    %c0_i32_0 = arith.constant 0 : i32
    %c0_i32_1 = arith.constant 0 : i32
    return %c0_i32, %c0_i32_0 : i32, i32
  }
  func.func @transform_10(%arg0: i32) -> (i32, i32) {
    %c0_i32 = arith.constant 0 : i32
    %c0_i32_0 = arith.constant 0 : i32
    %c0_i32_1 = arith.constant 0 : i32
    return %c0_i32, %c0_i32_0 : i32, i32
  }
  func.func @transform_11(%arg0: i32) -> (i32, i32) {
    %c0_i32 = arith.constant 0 : i32
    %c0_i32_0 = arith.constant 0 : i32
    %c0_i32_1 = arith.constant 0 : i32
    return %c0_i32, %c0_i32_0 : i32, i32
  }
  func.func @transform_12(%arg0: i32) -> (i32, i32) {
    %c0_i32 = arith.constant 0 : i32
    %c0_i32_0 = arith.constant 0 : i32
    %c0_i32_1 = arith.constant 0 : i32
    return %c0_i32, %c0_i32_0 : i32, i32
  }
  func.func @transform_13(%arg0: i32) -> (i32, i32) {
    %c0_i32 = arith.constant 0 : i32
    %c0_i32_0 = arith.constant 0 : i32
    return %arg0, %c0_i32 : i32, i32
  }
}

</mosaic_0001>

<bundles_post_ra>
// kernel: tpu_custom_call.1
= control target key start
LH: loop header
LB: loop body
LE: loop exit
PB: predicated region body
PF: predicated region fallthrough
CT: control target
= control target key end

     0   :  { %18 = vsyncpa [#allocation3], 0  ;;  %s2868_s0 = inlined_call_operand.vmem [shape: f32[16,32], index: 0, kind: input, shape index: {}]   ;;  %s2869_s1 = inlined_call_operand.vmem [shape: bf16[32,96], index: 1, kind: input, shape index: {}]   ;;  %s2870_s2 = inlined_call_operand.vmem [shape: f32[1,96], index: 2, kind: input, shape index: {}]   ;;  %s2871_s3 = inlined_call_operand.vmem [shape: bf16[32,32], index: 3, kind: input, shape index: {}]   ;;  %s2872_s4 = inlined_call_operand.vmem [shape: f32[1,32], index: 4, kind: input, shape index: {}]   ;;  %s2873_s5 = inlined_call_operand.vmem [shape: f32[1,32], index: 5, kind: input, shape index: {}]   ;;  %s2874_s6 = inlined_call_operand.vmem [shape: f32[1,32], index: 6, kind: input, shape index: {}]   ;;  %s2875_s7 = inlined_call_operand.hbm [shape: bf16[32,64], index: 7, kind: input, shape index: {}]   ;;  %s2876_s8 = inlined_call_operand.vmem [shape: f32[1,64], index: 8, kind: input, shape index: {}]   ;;  %s2877_s9 = inlined_call_operand.vmem [shape: bf16[64,32], index: 9, kind: input, shape index: {}]   ;;  %s2878_s10 = inlined_call_operand.vmem [shape: f32[1,32], index: 10, kind: input, shape index: {}]   ;;  %s2879_s11 = inlined_call_operand.vmem [shape: f32[1,32], index: 11, kind: input, shape index: {}]   ;;  %s2880_s12 = inlined_call_operand.vmem [shape: f32[1,32], index: 12, kind: input, shape index: {}]   ;;  %s2881_s13 = inlined_call_operand.hbm [shape: f32[16,32], index: 13, kind: output, shape index: {}]  }
   0x1   :  { %19 = vsyncpa [#allocation4], 0  ;;  %s38_s27 = sshll.u32 %s2875_s7, 4  ;;  %s2241_s28 = smov [#allocation2]   ;;  %s39_s27 = int_to_ptr.hbm [resolvable:$true] %s38_s27 }
   0x2   :  { %s40_s29 = sshll.u32 %s2241_s28, 4  ;;  %s2242_s30 = smov 64   ;;  %s41_s29 = int_to_ptr.vmem [resolvable:$true] %s40_s29 }
   0x3   :  { %s2243_s14 = smov 4  }
   0x4   :  { %46 = dma.hbm_to_vmem [thread:$0]  %s39_s27, 256, %s41_s29, [#allocation3], %s2242_s30, %s2242_s30, %s2243_s14  }
   0x5   :  { %2237 = dma.done.wait [#allocation3], 256  }
   0x6   :  { %2238 = vsyncadd [#allocation3], 4294967040  ;;  %v2066_v0 = vld [vmem:[%s2869_s1 + $0x8] sm:$0xff]  ;;  %v2065_v1 = vld [vmem:[%s2869_s1] sm:$0xff]  ;;  %vm85_vm0 = vcmask 261120   ;;  %s2244_s1 = smov 112  }
   0x7   :  { %v62_v2 = vld [vmem:[%s2868_s0] sm:$0xff]  ;;  %v63_v3 = vld [vmem:[%s2868_s0 + $0x8] sm:$0xff]  ;;  %95 = vmatpush.bf16.msra.mxu0 %v2066_v0  ;;  %s2245_s24 = smov 104   ;;  %s2246_s25 = smov 120   ;;  %v2247_v12 = vmov 1983009808  }
   0x8   :  { %v68_v4 = vpack.c.bf16 %v63_v3, %v62_v2  ;;  %v2105_v5 = vld [vmem:[%s2870_s2] ss:$0 sm:$0xff]  ;;  %v129_v13 = vunpack.c.l.s4 %v2247_v12  ;;  %s2248_s2 = smov 96   ;;  %vm124_vm1 = vcmask 1047556   ;;  %v2249_v41 = vmov 1934713408  }
   0x9   :  { %v153_v42 = vunpack.c.l.s4 %v2249_v41  ;;  %vm524_vm2 = vcmask 64512   ;;  %vm1122_vm3 = vcmask 1043456   ;;  %vm941_vm4 = vcmask 27648   ;;  %s2250_s26 = smov 8   ;;  %s2251_s27 = smov 24  }
   0xa   :  { %v2355_v17 = vunpack.c.0.s8 %v129_v13  ;;  %vm1118_vm5 = vcmask 31744   ;;  %s2252_s28 = smov 16   ;;  %vm1674_vm6 = vcmask 130048   ;;  %vm1677_vm7 = vcmask 195584   ;;  %s2254_s16 = smov [#allocation5]  }
   0xb   :  { %96 = vmatpush.bf16.msra.mxu0 %v2065_v1  ;;  %v2392_v46 = vunpack.c.0.s8 %v153_v42  ;;  %vm1860_vm15 = vcmask 523264   ;;  %s1942_s17 = sshll.u32 %s2254_s16, 4  ;;  %s1943_s17 = int_to_ptr.vmem [resolvable:$true] %s1942_s17 }
   0xe   :  { %1965 = vmatmul.msk.bf16.vlgmr.msra.gmra.mxu0 %vm85_vm0, %v68_v4 }
  0x8b   :  { %v98_v6 = vpop.f32.mrf.mxu0 }
  0x8c   :  { %v99_v7 = vadd.f32 %v2105_v5, %v98_v6 }
  0x8e   :  { %111 = vrot.lane.b32.xlu1 %v99_v7, %s2244_s1  ;;  %117 = vrot.lane.b32.xlu0 %v99_v7, %s2245_s24  ;;  %v126_v16 = vrot.slane %v99_v7, 4 }
  0x93   :  { %v100_v8 = vpop.f32.mrf.mxu0 }
  0x94   :  { %v2347_v9 = vadd.f32 %v2105_v5, %v100_v8 }
  0x96   :  { %119 = vrot.lane.b32.xlu2 %v2347_v9, %s2245_s24  ;;  %113 = vrot.lane.b32.xlu1 %v2347_v9, %s2244_s1  ;;  %v182_v52 = vrot.slane %v2347_v9, 4 }
  0x97   :  { %105 = vrot.lane.b32.xlu0 %v99_v7, %s2246_s25 }
  0x9e   :  { %107 = vrot.lane.b32.xlu2 %v2347_v9, %s2246_s25 }
  0xf0   :  { %v2369_v32 = vpop.permute.xlu2 %119 }
  0xf1   :  { %v192_v40 = vrot.slane %v2369_v32, 4 }
  0xf8   :  { %v2380_v38 = vpop.permute.xlu2 %107 }
  0xf9   :  { %v193_v43 = vsel %vm124_vm1, %v192_v40, %v2380_v38  ;;  %v194_v44 = vrot.slane %v2380_v38, 4 }
  0xfa   :  { %v2395_v47 = vperm.slane %v193_v43, %v2355_v17 }
  0xfb   :  { %v195_v49 = vsel %vm124_vm1, %v2369_v32, %v194_v44 }
  0xfc   :  { %v2405_v61 = vperm.slane %v195_v49, %v2355_v17  ;;  %v204_v62 = vrot.slane %v2395_v47, 4 }
  0xfe   :  { %v216_v44 = vrot.slane %v2405_v61, 4 }
 0x100   :  { %v112_v10 = vpop.permute.xlu1 %111  ;;  %v118_v11 = vpop.permute.xlu0 %117 }
 0x101   :  { %v123_v14 = vrot.slane %v112_v10, 4  ;;  %260 = vrot.lane.b32.xlu2 %v112_v10, %s2248_s2  ;;  %264 = vrot.lane.b32.xlu0 %v118_v11, %s2248_s2  ;;  %v127_v18 = vsel %vm124_vm1, %v112_v10, %v126_v16  ;;  %v136_v20 = vrot.slane %v118_v11, 4 }
 0x102   :  { %v135_v21 = vperm.slane %v127_v18, %v2355_v17 }
 0x103   :  { %v125_v15 = vsel %vm124_vm1, %v123_v14, %v99_v7 }
 0x104   :  { %v131_v19 = vperm.slane %v125_v15, %v2355_v17  ;;  %v162_v28 = vrot.slane %v135_v21, 4 }
 0x106   :  { %v150_v26 = vrot.slane %v131_v19, 4 }
 0x108   :  { %v114_v36 = vpop.permute.xlu1 %113 }
 0x109   :  { %v106_v22 = vpop.permute.xlu0 %105  ;;  %254 = vrot.lane.b32.xlu2 %v2347_v9, %s2248_s2  ;;  %252 = vrot.lane.b32.xlu0 %v99_v7, %s2248_s2  ;;  %v180_v53 = vrot.slane %v114_v36, 4  ;;  %v183_v1 = vsel %vm124_vm1, %v114_v36, %v182_v52 }
 0x10a   :  { %v137_v23 = vsel %vm124_vm1, %v136_v20, %v106_v22  ;;  %v138_v24 = vrot.slane %v106_v22, 4  ;;  %256 = vrot.lane.b32.xlu1 %v106_v22, %s2248_s2  ;;  %v2427_v20 = vperm.slane %v183_v1, %v2355_v17 }
 0x10b   :  { %v143_v25 = vperm.slane %v137_v23, %v2355_v17  ;;  %v181_v5 = vsel %vm124_vm1, %v180_v53, %v2347_v9 }
 0x10c   :  { %v139_v27 = vsel %vm124_vm1, %v118_v11, %v138_v24 }
 0x10d   :  { %v147_v29 = vperm.slane %v139_v27, %v2355_v17  ;;  %v148_v30 = vrot.slane %v143_v25, 4  ;;  %v151_v31 = vsel %vm124_vm1, %v143_v25, %v150_v26 }
 0x10e   :  { %v159_v60 = vperm.slane %v151_v31, %v2392_v46 }
 0x10f   :  { %v160_v33 = vrot.slane %v147_v29, 4  ;;  %v149_v34 = vsel %vm124_vm1, %v148_v30, %v131_v19  ;;  %v2373_v35 = vsel %vm124_vm1, %v147_v29, %v162_v28  ;;  %v2424_v19 = vperm.slane %v181_v5, %v2355_v17 }
 0x110   :  { %v155_v8 = vperm.slane %v149_v34, %v2392_v46  ;;  %v174_v12 = vrot.slane %v159_v60, 4  ;;  %v238_v27 = vmul.f32 0.35355338, %v159_v60  ;;  %v218_v60 = vrot.slane %v2427_v20, 4 }
 0x111   :  { %396 = vrot.lane.b32.xlu2 %v112_v10, %s2242_s30  ;;  %266 = vrot.lane.b32.xlu0 %v2369_v32, %s2248_s2  ;;  %v161_v37 = vsel %vm124_vm1, %v160_v33, %v135_v21 }
 0x112   :  { %262 = vrot.lane.b32.xlu1 %v114_v36, %s2248_s2  ;;  %v2421_v18 = vperm.slane %v161_v37, %v2392_v46  ;;  %v236_v26 = vmul.f32 0.35355338, %v155_v8  ;;  %v175_v33 = vsel %vm124_vm1, 0.0, %v174_v12  ;;  %v172_v41 = vrot.slane %v155_v8, 4 }
 0x119   :  { %398 = vrot.lane.b32.xlu2 %v114_v36, %s2242_s30  ;;  %388 = vrot.lane.b32.xlu0 %v99_v7, %s2242_s30 }
 0x11a   :  { %258 = vrot.lane.b32.xlu1 %v2380_v38, %s2248_s2 }
 0x121   :  { %392 = vrot.lane.b32.xlu0 %v106_v22, %s2242_s30 }
 0x122   :  { %400 = vrot.lane.b32.xlu1 %v118_v11, %s2242_s30 }
 0x15b   :  { %v261_v45 = vpop.permute.xlu2 %260 }
 0x15c   :  { %v276_v48 = vrot.slane %v261_v45, 4 }
 0x163   :  { %v255_v13 = vpop.permute.xlu2 %254 }
 0x164   :  { %v334_v34 = vrot.slane %v255_v13, 4 }
 0x173   :  { %v265_v39 = vpop.permute.xlu0 %264 }
 0x174   :  { %v288_v50 = vrot.slane %v265_v39, 4 }
 0x17b   :  { %v253_v51 = vpop.permute.xlu0 %252 }
 0x17c   :  { %v257_v54 = vpop.permute.xlu1 %256  ;;  %v277_v55 = vsel %vm124_vm1, %v276_v48, %v253_v51  ;;  %v278_v56 = vrot.slane %v253_v51, 4  ;;  %v205_v48 = vsel %vm124_vm1, %v204_v62, %v2424_v19  ;;  %v217_v51 = vsel %vm124_vm1, %v216_v44, %v2427_v20  ;;  %v397_v62 = vpop.permute.xlu2 %396 }
 0x17d   :  { %v289_v57 = vsel %vm124_vm1, %v288_v50, %v257_v54  ;;  %v290_v58 = vrot.slane %v257_v54, 4  ;;  %v283_v59 = vperm.slane %v277_v55, %v2355_v17  ;;  %v239_v50 = vmul.f32 0.35355338, %v175_v33 }
 0x17e   :  { %v295_v63 = vperm.slane %v289_v57, %v2355_v17  ;;  %v279_v0 = vsel %vm124_vm1, %v261_v45, %v278_v56  ;;  %v173_v57 = vsel %vm124_vm1, 0.0, %v172_v41  ;;  %v2469_v5 = vperm.slane %v217_v51, %v2392_v46 }
 0x17f   :  { %v291_v2 = vsel %vm124_vm1, %v265_v39, %v290_v58  ;;  %v287_v3 = vperm.slane %v279_v0, %v2355_v17  ;;  %v302_v4 = vrot.slane %v283_v59, 4  ;;  %v176_v39 = vrot.slane %v2421_v18, 4 }
 0x180   :  { %v299_v6 = vperm.slane %v291_v2, %v2355_v17  ;;  %v300_v7 = vrot.slane %v295_v63, 4  ;;  %v211_v58 = vperm.slane %v205_v48, %v2392_v46  ;;  %v237_v8 = vmul.f32 0.35355338, %v173_v57 }
 0x181   :  { %v314_v10 = vrot.slane %v287_v3, 4  ;;  %v303_v11 = vsel %vm124_vm1, %v295_v63, %v302_v4  ;;  %v177_v53 = vsel %vm124_vm1, 0.0, %v176_v39  ;;  %v2466_v4 = vperm.slane %v2373_v35, %v2392_v46 }
 0x182   :  { %v312_v14 = vrot.slane %v299_v6, 4  ;;  %v301_v15 = vsel %vm124_vm1, %v300_v7, %v283_v59  ;;  %v311_v16 = vperm.slane %v303_v11, %v2392_v46  ;;  %v206_v59 = vrot.slane %v2424_v19, 4 }
 0x183   :  { %v267_v21 = vpop.permute.xlu0 %266  ;;  %v307_v22 = vperm.slane %v301_v15, %v2392_v46  ;;  %v315_v23 = vsel %vm124_vm1, %v299_v6, %v314_v10  ;;  %v412_v10 = vrot.slane %v397_v62, 4 }
 0x184   :  { %v313_v24 = vsel %vm124_vm1, %v312_v14, %v287_v3  ;;  %v263_v25 = vpop.permute.xlu1 %262  ;;  %1970 = vmatpush.xpose.msk.msra.mxu3 %vm524_vm2, %v311_v16  ;;  %v326_v28 = vrot.slane %v311_v16, 4  ;;  %v323_v37 = vperm.slane %v315_v23, %v2392_v46  ;;  %v344_v55 = vrot.slane %v267_v21, 4 }
 0x185   :  { %v332_v29 = vrot.slane %v263_v25, 4  ;;  %v324_v30 = vrot.slane %v307_v22, 4  ;;  %1966 = vmatpush.xpose.msk.msra.mxu2 %vm524_vm2, %v307_v22  ;;  %v319_v31 = vperm.slane %v313_v24, %v2392_v46  ;;  %v335_v45 = vsel %vm124_vm1, %v263_v25, %v334_v34 }
 0x186   :  { %v327_v36 = vsel %vm124_vm1, 0.0, %v326_v28  ;;  %v343_v54 = vperm.slane %v335_v45, %v2355_v17  ;;  %v330_v63 = vrot.slane %v323_v37, 4  ;;  %v241_v3 = vmul.f32 0.35355338, %v177_v53 }
 0x187   :  { %v333_v40 = vsel %vm124_vm1, %v332_v29, %v255_v13  ;;  %v325_v42 = vsel %vm124_vm1, 0.0, %v324_v30  ;;  %1971 = vmatmul.msk.f32.vlgmr.msra.gmra.mxu3 %vm524_vm2, %v238_v27  ;;  %1972 = vmatpush.xpose.msk.msra.mxu1 %vm524_vm2, %v327_v36  ;;  %v328_v43 = vrot.slane %v319_v31, 4  ;;  %v228_v13 = vrot.slane %v211_v58, 4 }
 0x188   :  { %1967 = vmatmul.msk.f32.vlgmr.msra.gmra.mxu2 %vm524_vm2, %v236_v26  ;;  %v339_v52 = vperm.slane %v333_v40, %v2355_v17  ;;  %v370_v11 = vrot.slane %v343_v54, 4  ;;  %v331_v16 = vsel %vm124_vm1, 0.0, %v330_v63  ;;  %v207_v22 = vsel %vm124_vm1, %v2395_v47, %v206_v59 }
 0x189   :  { %1968 = vmatpush.xpose.msk.msrb.mxu2 %vm524_vm2, %v325_v42  ;;  %v329_v49 = vsel %vm124_vm1, 0.0, %v328_v43  ;;  %v178_v28 = vrot.slane %v2466_v4, 4  ;;  %v215_v42 = vperm.slane %v207_v22, %v2392_v46  ;;  %v240_v45 = vmul.f32 0.35355338, %v2421_v18 }
 0x18a   :  { %1976 = vmatpush.xpose.msk.msrb.mxu3 %vm524_vm2, %v329_v49  ;;  %1973 = vmatmul.msk.f32.vlgmr.msra.gmra.mxu1 %vm524_vm2, %v239_v50  ;;  %v358_v6 = vrot.slane %v339_v52, 4  ;;  %v229_v48 = vsel %vm124_vm1, 0.0, %v228_v13  ;;  %v219_v53 = vsel %vm124_vm1, %v2405_v61, %v218_v60 }
 0x18b   :  { %1978 = vmatpush.xpose.msk.msrb.mxu1 %vm524_vm2, %v323_v37  ;;  %v389_v56 = vpop.permute.xlu0 %388  ;;  %v246_v59 = vmul.f32 0.35355338, %v215_v42 }
 0x18c   :  { %v259_v0 = vpop.permute.xlu1 %258  ;;  %v413_v20 = vsel %vm124_vm1, %v412_v10, %v389_v56  ;;  %v414_v26 = vrot.slane %v389_v56, 4  ;;  %v227_v10 = vperm.slane %v219_v53, %v2392_v46 }
 0x18d   :  { %1974 = vmatpush.xpose.msk.msra.mxu2 %vm524_vm2, %v319_v31  ;;  %v345_v1 = vsel %vm124_vm1, %v344_v55, %v259_v0  ;;  %v346_v2 = vrot.slane %v259_v0, 4  ;;  %v244_v31 = vmul.f32 0.35355338, %v211_v58  ;;  %v419_v33 = vperm.slane %v413_v20, %v2355_v17 }
 0x18e   :  { %v351_v7 = vperm.slane %v345_v1, %v2355_v17  ;;  %v415_v43 = vsel %vm124_vm1, %v397_v62, %v414_v26  ;;  %v245_v62 = vmul.f32 0.35355338, %v229_v48  ;;  %v179_v0 = vsel %vm124_vm1, 0.0, %v178_v28 }
 0x18f   :  { %v347_v12 = vsel %vm124_vm1, %v267_v21, %v346_v2  ;;  %1977 = vmatmul.msk.f32.vlgmr.msrb.gmra.mxu3 %vm524_vm2, %v241_v3  ;;  %v242_v21 = vmul.f32 0.35355338, %v2466_v4  ;;  %v423_v56 = vperm.slane %v415_v43, %v2355_v17  ;;  %v232_v2 = vrot.slane %v2469_v5, 4 }
 0x190   :  { %v355_v14 = vperm.slane %v347_v12, %v2355_v17  ;;  %v356_v15 = vrot.slane %v351_v7, 4  ;;  %v359_v35 = vsel %vm124_vm1, %v351_v7, %v358_v6  ;;  %1969 = vmatmul.msk.f32.vlgmr.msrb.gmra.mxu2 %vm524_vm2, %v237_v8  ;;  %v248_v12 = vmul.f32 0.35355338, %v2469_v5 }
 0x191   :  { %v367_v19 = vperm.slane %v359_v35, %v2392_v46  ;;  %1980 = vmatpush.xpose.msk.msrb.mxu2 %vm524_vm2, %v331_v16  ;;  %v450_v7 = vrot.slane %v423_v56, 4  ;;  %v233_v35 = vsel %vm124_vm1, 0.0, %v232_v2  ;;  %v230_v16 = vrot.slane %v215_v42, 4 }
 0x192   :  { %v357_v23 = vsel %vm124_vm1, %v356_v15, %v339_v52  ;;  %v368_v24 = vrot.slane %v355_v14, 4  ;;  %v371_v25 = vsel %vm124_vm1, %v355_v14, %v370_v11  ;;  %1979 = vmatmul.msk.f32.vlgmr.msrb.gmra.mxu1 %vm524_vm2, %v242_v21  ;;  %v243_v11 = vmul.f32 0.35355338, %v179_v0 }
 0x193   :  { %v363_v27 = vperm.slane %v357_v23, %v2392_v46  ;;  %v393_v29 = vpop.permute.xlu0 %392  ;;  %v2490_v30 = vperm.slane %v371_v25, %v2392_v46  ;;  %1986 = vmatpush.xpose.msk.msra.mxu1 %vm524_vm2, %v367_v19  ;;  %v382_v37 = vrot.slane %v367_v19, 4  ;;  %v250_v20 = vmul.f32 0.35355338, %v227_v10 }
 0x194   :  { %v401_v47 = vpop.permute.xlu1 %400  ;;  %v426_v34 = vrot.slane %v393_v29, 4  ;;  %v369_v36 = vsel %vm124_vm1, %v368_v24, %v343_v54  ;;  %v438_v54 = vrot.slane %v419_v33, 4  ;;  %v249_v21 = vmul.f32 0.35355338, %v233_v35 }
 0x195   :  { %v424_v39 = vrot.slane %v401_v47, 4  ;;  %1982 = vmatpush.xpose.msk.msra.mxu3 %vm524_vm2, %v363_v27  ;;  %v375_v40 = vperm.slane %v369_v36, %v2392_v46  ;;  %v380_v41 = vrot.slane %v363_v27, 4  ;;  %v383_v18 = vsel %vm124_vm1, 0.0, %v382_v37 }
 0x196   :  { %v427_v44 = vsel %vm124_vm1, %v401_v47, %v426_v34  ;;  %v386_v4 = vrot.slane %v2490_v30, 4  ;;  %v231_v24 = vsel %vm124_vm1, 0.0, %v230_v16  ;;  %v234_v27 = vrot.slane %v227_v10, 4 }
 0x197   :  { %1994 = vmatpush.xpose.msk.msrb.mxu1 %vm524_vm2, %v2490_v30  ;;  %v425_v49 = vsel %vm124_vm1, %v424_v39, %v393_v29  ;;  %v435_v50 = vperm.slane %v427_v44, %v2355_v17  ;;  %v381_v51 = vsel %vm124_vm1, 0.0, %v380_v41  ;;  %v384_v52 = vrot.slane %v375_v40, 4 }
 0x198   :  { %v431_v55 = vperm.slane %v425_v49, %v2355_v17  ;;  %1975 = vmatmul.msk.f32.vlgmr.msra.gmra.mxu2 %vm524_vm2, %v240_v45  ;;  %1983 = vmatmul.msk.f32.vlgmr.msra.gmra.mxu3 %vm524_vm2, %v244_v31  ;;  %v387_v19 = vsel %vm124_vm1, 0.0, %v386_v4  ;;  %v247_v26 = vmul.f32 0.35355338, %v231_v24  ;;  %v235_v29 = vsel %vm124_vm1, 0.0, %v234_v27  ;;  %v2608_v4 = vpop.permute.xlu2 %398 }
 0x199   :  { %1990 = vmatpush.xpose.msk.msrb.mxu3 %vm524_vm2, %v375_v40  ;;  %v448_v57 = vrot.slane %v435_v50, 4  ;;  %1984 = vmatpush.xpose.msk.msrb.mxu0 %vm524_vm2, %v381_v51  ;;  %v385_v58 = vsel %vm124_vm1, 0.0, %v384_v52  ;;  %v451_v14 = vsel %vm124_vm1, %v435_v50, %v450_v7  ;;  %v251_v31 = vmul.f32 0.35355338, %v235_v29 }
 0x19a   :  { %1988 = vmatpush.xpose.msk.msra.mxu2 %vm524_vm2, %v383_v18  ;;  %v436_v61 = vrot.slane %v431_v55, 4  ;;  %v439_v60 = vsel %vm124_vm1, %v431_v55, %v438_v54  ;;  %1987 = vmatmul.msk.f32.vlgmr.msra.gmra.mxu1 %vm524_vm2, %v246_v59  ;;  %v459_v23 = vperm.slane %v451_v14, %v2392_v46 }
 0x19b   :  { %v447_v63 = vperm.slane %v439_v60, %v2392_v46  ;;  %v449_v1 = vsel %vm124_vm1, %v448_v57, %v423_v56 }
 0x19c   :  { %v437_v3 = vsel %vm124_vm1, %v436_v61, %v419_v33  ;;  %1985 = vmatmul.msk.f32.vlgmr.msrb.gmra.mxu0 %vm524_vm2, %v245_v62  ;;  %v455_v6 = vperm.slane %v449_v1, %v2392_v46  ;;  %v466_v30 = vrot.slane %v459_v23, 4 }
 0x19d   :  { %1992 = vmatpush.xpose.msk.msra.mxu0 %vm524_vm2, %v385_v58  ;;  %v443_v8 = vperm.slane %v437_v3, %v2392_v46  ;;  %2002 = vmatpush.msk.msra.mxu1 %vm1122_vm3, %v447_v63  ;;  %v462_v25 = vrot.slane %v447_v63, 4 }
 0x19e   :  { %v464_v13 = vrot.slane %v455_v6, 4  ;;  %v467_v33 = vsel %vm124_vm1, 0.0, %v466_v30 }
 0x19f   :  { %1998 = vmatpush.msk.msra.mxu3 %vm1122_vm3, %v443_v8  ;;  %v460_v15 = vrot.slane %v443_v8, 4  ;;  %v463_v28 = vsel %vm124_vm1, 0.0, %v462_v25 }
 0x1a0   :  { %1981 = vmatmul.msk.f32.vlgmr.msrb.gmra.mxu2 %vm524_vm2, %v243_v11  ;;  %1991 = vmatmul.msk.f32.vlgmr.msrb.gmra.mxu3 %vm524_vm2, %v248_v12  ;;  %v465_v22 = vsel %vm124_vm1, 0.0, %v464_v13 }
 0x1a1   :  { %1996 = vmatpush.xpose.msk.msrb.mxu2 %vm524_vm2, %v387_v19  ;;  %2006 = vmatpush.msk.msrb.mxu3 %vm1122_vm3, %v455_v6  ;;  %v461_v5 = vsel %vm124_vm1, 0.0, %v460_v15 }
 0x1a2   :  { %2000 = vmatpush.msk.msrb.mxu0 %vm1122_vm3, %v461_v5  ;;  %1995 = vmatmul.msk.f32.vlgmr.msrb.gmra.mxu1 %vm524_vm2, %v250_v20 }
 0x1a3   :  { %2010 = vmatpush.msk.msrb.mxu1 %vm1122_vm3, %v459_v23 }
 0x1a4   :  { %1993 = vmatmul.msk.f32.vlgmr.msra.gmra.mxu0 %vm524_vm2, %v249_v21 }
 0x1a5   :  { %2008 = vmatpush.msk.msra.mxu0 %vm1122_vm3, %v465_v22 }
 0x1a8   :  { %1989 = vmatmul.msk.f32.vlgmr.msra.gmra.mxu2 %vm524_vm2, %v247_v26 }
 0x1a9   :  { %2004 = vmatpush.msk.msra.mxu2 %vm1122_vm3, %v463_v28 }
 0x1b0   :  { %1997 = vmatmul.msk.f32.vlgmr.msrb.gmra.mxu2 %vm524_vm2, %v251_v31 }
 0x1b1   :  { %2012 = vmatpush.msk.msrb.mxu2 %vm1122_vm3, %v467_v33 }
 0x207   :  { %v626_v47 = vpop.f32.mrf.mxu1 }
 0x208   :  { %v951_v34 = vsel %vm941_vm4, %v626_v47, -inf }
 0x209   :  { %952 = vmax.xlane.f32.xlu2 %v951_v34 }
 0x20a   :  { %v600_v36 = vpop.f32.mrf.mxu3 }
 0x20b   :  { %v548_v37 = vpop.f32.mrf.mxu2  ;;  %v948_v39 = vsel %vm941_vm4, %v600_v36, -inf }
 0x20c   :  { %949 = vmax.xlane.f32.xlu1 %v948_v39  ;;  %v942_v40 = vsel %vm941_vm4, %v548_v37, -inf }
 0x20d   :  { %943 = vmax.xlane.f32.xlu0 %v942_v40 }
 0x20f   :  { %v704_v41 = vpop.f32.mrf.mxu1 }
 0x210   :  { %v960_v43 = vsel %vm941_vm4, %v704_v41, -inf }
 0x212   :  { %v2562_v45 = vpop.f32.mrf.mxu3 }
 0x213   :  { %v574_v42 = vpop.f32.mrf.mxu2  ;;  %v957_v51 = vsel %vm941_vm4, %v2562_v45, -inf }
 0x214   :  { %v945_v44 = vsel %vm941_vm4, %v574_v42, -inf  ;;  %961 = vmax.xlane.f32.xlu1 %v960_v43 }
 0x215   :  { %946 = vmax.xlane.f32.xlu2 %v945_v44 }
 0x217   :  { %v2572_v52 = vpop.f32.mrf.mxu1 }
 0x218   :  { %v972_v56 = vsel %vm941_vm4, %v2572_v52, -inf }
 0x219   :  { %v2564_v48 = vpop.f32.mrf.mxu0 }
 0x21a   :  { %v969_v49 = vsel %vm941_vm4, %v2564_v48, -inf }
 0x21b   :  { %970 = vmax.xlane.f32.xlu0 %v969_v49  ;;  %v2568_v50 = vpop.f32.mrf.mxu2  ;;  %v2584_v57 = vpop.f32.mrf.mxu3 }
 0x21c   :  { %v954_v55 = vsel %vm941_vm4, %v2568_v50, -inf  ;;  %v966_v61 = vsel %vm941_vm4, %v2584_v57, -inf }
 0x21d   :  { %958 = vmax.xlane.f32.xlu2 %v957_v51 }
 0x21f   :  { %v2586_v58 = vpop.f32.mrf.mxu1 }
 0x220   :  { %v984_v59 = vsel %vm941_vm4, %v2586_v58, -inf }
 0x221   :  { %v2574_v53 = vpop.f32.mrf.mxu0 }
 0x222   :  { %v981_v54 = vsel %vm941_vm4, %v2574_v53, -inf }
 0x223   :  { %982 = vmax.xlane.f32.xlu1 %v981_v54  ;;  %955 = vmax.xlane.f32.xlu0 %v954_v55  ;;  %v2580_v18 = vpop.f32.mrf.mxu2  ;;  %v2596_v63 = vpop.f32.mrf.mxu3 }
 0x224   :  { %v963_v62 = vsel %vm941_vm4, %v2580_v18, -inf  ;;  %v978_v3 = vsel %vm941_vm4, %v2596_v63, -inf }
 0x225   :  { %973 = vmax.xlane.f32.xlu2 %v972_v56 }
 0x22b   :  { %985 = vmax.xlane.f32.xlu0 %v984_v59  ;;  %967 = vmax.xlane.f32.xlu1 %v966_v61  ;;  %v2592_v60 = vpop.f32.mrf.mxu2 }
 0x22c   :  { %v975_v0 = vsel %vm941_vm4, %v2592_v60, -inf }
 0x22d   :  { %964 = vmax.xlane.f32.xlu2 %v963_v62 }
 0x233   :  { %976 = vmax.xlane.f32.xlu0 %v975_v0  ;;  %v2600_v1 = vpop.f32.mrf.mxu2 }
 0x234   :  { %v987_v2 = vsel %vm941_vm4, %v2600_v1, -inf }
 0x235   :  { %988 = vmax.xlane.f32.xlu1 %v987_v2  ;;  %979 = vmax.xlane.f32.xlu2 %v978_v3 }
 0x247   :  { %390 = vrot.lane.b32.xlu0 %v2347_v9, %s2242_s30 }
 0x27c   :  { %v953_v6 = vpop.xlane.xlu2 %952 }
 0x27d   :  { %v993_v7 = vsub.f32 %v626_v47, %v953_v6 }
 0x27f   :  { %v950_v8 = vpop.xlane.xlu1 %949  ;;  %v1012_v10 = vmul.f32 1.442695, %v993_v7 }
 0x280   :  { %v992_v11 = vsub.f32 %v600_v36, %v950_v8  ;;  %v944_v12 = vpop.xlane.xlu0 %943 }
 0x281   :  { %v990_v13 = vsub.f32 %v548_v37, %v944_v12  ;;  %2113 = vpow2.f32 %v1012_v10 }
 0x282   :  { %v1010_v14 = vmul.f32 1.442695, %v992_v11 }
 0x283   :  { %v1006_v15 = vmul.f32 1.442695, %v990_v13 }
 0x284   :  { %2115 = vpow2.f32 %v1010_v14 }
 0x285   :  { %2117 = vpow2.f32 %v1006_v15 }
 0x287   :  { %v962_v35 = vpop.xlane.xlu1 %961  ;;  %v2610_v16 = vpop.eup %2113 }
 0x288   :  { %v947_v19 = vpop.xlane.xlu2 %946  ;;  %v996_v5 = vsub.f32 %v704_v41, %v962_v35  ;;  %v1047_v20 = vsel %vm941_vm4, %v2610_v16, 0.0 }
 0x289   :  { %v991_v9 = vsub.f32 %v574_v42, %v947_v19  ;;  %1048 = vadd.xlane.f32.xlu2 %v1047_v20 }
 0x28a   :  { %v2614_v21 = vpop.eup %2115  ;;  %v1018_v22 = vmul.f32 1.442695, %v996_v5 }
 0x28b   :  { %v2616_v23 = vpop.eup %2117  ;;  %v1008_v24 = vmul.f32 1.442695, %v991_v9  ;;  %v1044_v25 = vsel %vm941_vm4, %v2614_v21, 0.0 }
 0x28c   :  { %2119 = vpow2.f32 %v1018_v22  ;;  %1045 = vadd.xlane.f32.xlu0 %v1044_v25  ;;  %v1038_v26 = vsel %vm941_vm4, %v2616_v23, 0.0 }
 0x28d   :  { %2121 = vpow2.f32 %v1008_v24  ;;  %1039 = vadd.xlane.f32.xlu1 %v1038_v26 }
 0x28e   :  { %v971_v27 = vpop.xlane.xlu0 %970 }
 0x28f   :  { %v999_v13 = vsub.f32 %v2564_v48, %v971_v27 }
 0x290   :  { %v959_v28 = vpop.xlane.xlu2 %958 }
 0x291   :  { %v995_v40 = vsub.f32 %v2562_v45, %v959_v28  ;;  %v1024_v14 = vmul.f32 1.442695, %v999_v13 }
 0x292   :  { %v2622_v29 = vpop.eup %2119 }
 0x293   :  { %v2624_v30 = vpop.eup %2121  ;;  %v1056_v31 = vsel %vm941_vm4, %v2622_v29, 0.0  ;;  %v1016_v41 = vmul.f32 1.442695, %v995_v40 }
 0x294   :  { %v1041_v33 = vsel %vm941_vm4, %v2624_v30, 0.0 }
 0x295   :  { %1057 = vadd.xlane.f32.xlu1 %v1056_v31  ;;  %1042 = vadd.xlane.f32.xlu2 %v1041_v33 }
 0x296   :  { %v983_v47 = vpop.xlane.xlu1 %982  ;;  %v956_v34 = vpop.xlane.xlu0 %955 }
 0x297   :  { %v994_v36 = vsub.f32 %v2568_v50, %v956_v34  ;;  %v1003_v2 = vsub.f32 %v2574_v53, %v983_v47 }
 0x298   :  { %v974_v37 = vpop.xlane.xlu2 %973 }
 0x299   :  { %v1014_v39 = vmul.f32 1.442695, %v994_v36  ;;  %v1000_v51 = vsub.f32 %v2572_v52, %v974_v37  ;;  %v1032_v3 = vmul.f32 1.442695, %v1003_v2 }
 0x29b   :  { %2123 = vpow2.f32 %v1014_v39  ;;  %v1026_v50 = vmul.f32 1.442695, %v1000_v51 }
 0x29c   :  { %2125 = vpow2.f32 %v1016_v41 }
 0x29e   :  { %v968_v42 = vpop.xlane.xlu1 %967  ;;  %v986_v6 = vpop.xlane.xlu0 %985 }
 0x29f   :  { %v1004_v35 = vsub.f32 %v2586_v58, %v986_v6  ;;  %v998_v48 = vsub.f32 %v2584_v57, %v968_v42 }
 0x2a0   :  { %v965_v43 = vpop.xlane.xlu2 %964 }
 0x2a1   :  { %v997_v44 = vsub.f32 %v2580_v18, %v965_v43  ;;  %v2633_v49 = vpop.eup %2123  ;;  %v1034_v5 = vmul.f32 1.442695, %v1004_v35  ;;  %v1022_v20 = vmul.f32 1.442695, %v998_v48 }
 0x2a2   :  { %v1050_v55 = vsel %vm941_vm4, %v2633_v49, 0.0  ;;  %v2638_v56 = vpop.eup %2125 }
 0x2a3   :  { %v1020_v54 = vmul.f32 1.442695, %v997_v44  ;;  %1051 = vadd.xlane.f32.xlu0 %v1050_v55  ;;  %v1053_v18 = vsel %vm941_vm4, %v2638_v56, 0.0 }
 0x2a5   :  { %2127 = vpow2.f32 %v1020_v54 }
 0x2a6   :  { %2129 = vpow2.f32 %v1026_v50  ;;  %v977_v10 = vpop.xlane.xlu0 %976 }
 0x2a7   :  { %v1001_v11 = vsub.f32 %v2592_v60, %v977_v10 }
 0x2a8   :  { %v989_v45 = vpop.xlane.xlu1 %988  ;;  %v980_v22 = vpop.xlane.xlu2 %979 }
 0x2a9   :  { %v1005_v59 = vsub.f32 %v2600_v1, %v989_v45  ;;  %v1028_v12 = vmul.f32 1.442695, %v1001_v11  ;;  %v1002_v24 = vsub.f32 %v2596_v63, %v980_v22 }
 0x2ab   :  { %v2641_v61 = vpop.eup %2127  ;;  %1054 = vadd.xlane.f32.xlu0 %v1053_v18  ;;  %v1036_v62 = vmul.f32 1.442695, %v1005_v59  ;;  %v1030_v25 = vmul.f32 1.442695, %v1002_v24 }
 0x2ac   :  { %v1059_v52 = vsel %vm941_vm4, %v2641_v61, 0.0  ;;  %v2649_v0 = vpop.eup %2129 }
 0x2ad   :  { %1060 = vadd.xlane.f32.xlu1 %v1059_v52  ;;  %394 = vrot.lane.b32.xlu2 %v2380_v38, %s2242_s30  ;;  %2131 = vpow2.f32 %v1036_v62  ;;  %v1068_v1 = vsel %vm941_vm4, %v2649_v0, 0.0  ;;  %v468_v62 = vrot.slane %v2608_v4, 4 }
 0x2ae   :  { %2133 = vpow2.f32 %v1032_v3 }
 0x2af   :  { %2135 = vpow2.f32 %v1028_v12 }
 0x2b0   :  { %2137 = vpow2.f32 %v1024_v14 }
 0x2b1   :  { %2139 = vpow2.f32 %v1034_v5 }
 0x2b2   :  { %2141 = vpow2.f32 %v1022_v20 }
 0x2b3   :  { %1069 = vadd.xlane.f32.xlu0 %v1068_v1  ;;  %v2654_v7 = vpop.eup %2131  ;;  %2143 = vpow2.f32 %v1030_v25 }
 0x2b4   :  { %v1083_v8 = vsel %vm941_vm4, %v2654_v7, 0.0  ;;  %v2658_v38 = vpop.eup %2133 }
 0x2b5   :  { %v1077_v53 = vsel %vm941_vm4, %v2658_v38, 0.0  ;;  %v2666_v15 = vpop.eup %2135 }
 0x2b6   :  { %v1071_v19 = vsel %vm941_vm4, %v2666_v15, 0.0  ;;  %v2671_v60 = vpop.eup %2137 }
 0x2b7   :  { %v2676_v9 = vpop.eup %2139 }
 0x2b8   :  { %v1080_v58 = vsel %vm941_vm4, %v2676_v9, 0.0  ;;  %v2681_v26 = vpop.eup %2141 }
 0x2b9   :  { %v1062_v27 = vsel %vm941_vm4, %v2681_v26, 0.0  ;;  %v2685_v57 = vpop.eup %2143  ;;  %v391_v28 = vpop.permute.xlu0 %390 }
 0x2ba   :  { %v1074_v31 = vsel %vm941_vm4, %v2685_v57, 0.0  ;;  %v470_v52 = vrot.slane %v391_v28, 4  ;;  %v469_v3 = vsel %vm124_vm1, %v468_v62, %v391_v28 }
 0x2bb   :  { %1084 = vadd.xlane.f32.xlu0 %v1083_v8 }
 0x2c3   :  { %1078 = vadd.xlane.f32.xlu0 %v1077_v53 }
 0x2c6   :  { %402 = vrot.lane.b32.xlu1 %v2369_v32, %s2242_s30  ;;  %v1065_v32 = vsel %vm941_vm4, %v2671_v60, 0.0 }
 0x2d6   :  { %1072 = vadd.xlane.f32.xlu2 %v1071_v19 }
 0x2de   :  { %1066 = vadd.xlane.f32.xlu2 %v1065_v32 }
 0x2e6   :  { %1081 = vadd.xlane.f32.xlu2 %v1080_v58 }
 0x2f0   :  { %1063 = vadd.xlane.f32.xlu1 %v1062_v27 }
 0x2f8   :  { %1075 = vadd.xlane.f32.xlu1 %v1074_v31 }
 0x2fc   :  { %v1049_v33 = vpop.xlane.xlu2 %1048 }
 0x2fd   :  { %2145 = vrcp.f32 %v1049_v33 }
 0x2ff   :  { %v1046_v47 = vpop.xlane.xlu0 %1045 }
 0x300   :  { %2147 = vrcp.f32 %v1046_v47  ;;  %v1040_v63 = vpop.xlane.xlu1 %1039 }
 0x301   :  { %2149 = vrcp.f32 %v1040_v63 }
 0x303   :  { %v2146_v34 = vpop.eup %2145 }
 0x304   :  { %v1105_v36 = vmul.f32 %v2146_v34, %v2610_v16 }
 0x306   :  { %v2148_v37 = vpop.eup %2147  ;;  %2005 = vmatmul.msk.f32.vlgmr.msra.gmra.mxu2 %vm1118_vm5, %v1105_v36 }
 0x307   :  { %v2150_v39 = vpop.eup %2149  ;;  %v1104_v40 = vmul.f32 %v2148_v37, %v2614_v21 }
 0x308   :  { %v1102_v41 = vmul.f32 %v2150_v39, %v2616_v23  ;;  %v1058_v42 = vpop.xlane.xlu1 %1057  ;;  %v1043_v43 = vpop.xlane.xlu2 %1042 }
 0x309   :  { %2151 = vrcp.f32 %v1058_v42  ;;  %2003 = vmatmul.msk.f32.vlgmr.msra.gmra.mxu1 %vm1118_vm5, %v1104_v40 }
 0x30a   :  { %2153 = vrcp.f32 %v1043_v43  ;;  %1999 = vmatmul.msk.f32.vlgmr.msra.gmra.mxu3 %vm1118_vm5, %v1102_v41 }
 0x30f   :  { %v2152_v44 = vpop.eup %2151 }
 0x310   :  { %v2154_v51 = vpop.eup %2153  ;;  %v1108_v16 = vmul.f32 %v2152_v44, %v2622_v29  ;;  %v395_v2 = vpop.permute.xlu2 %394 }
 0x311   :  { %v1103_v54 = vmul.f32 %v2154_v51, %v2624_v30  ;;  %v482_v8 = vrot.slane %v395_v2, 4 }
 0x312   :  { %2011 = vmatmul.msk.f32.vlgmr.msrb.gmra.mxu1 %vm1118_vm5, %v1108_v16 }
 0x313   :  { %2001 = vmatmul.msk.f32.vlgmr.msrb.gmra.mxu0 %vm1118_vm5, %v1103_v54 }
 0x316   :  { %v1052_v21 = vpop.xlane.xlu0 %1051 }
 0x317   :  { %2155 = vrcp.f32 %v1052_v21 }
 0x31d   :  { %v2156_v23 = vpop.eup %2155 }
 0x31e   :  { %v1106_v55 = vmul.f32 %v2156_v23, %v2633_v49  ;;  %v1055_v50 = vpop.xlane.xlu0 %1054  ;;  %v471_v49 = vsel %vm124_vm1, %v2608_v4, %v470_v52 }
 0x31f   :  { %2157 = vrcp.f32 %v1055_v50  ;;  %v479_v6 = vperm.slane %v471_v49, %v2355_v17 }
 0x320   :  { %v1061_v45 = vpop.xlane.xlu1 %1060  ;;  %2007 = vmatmul.msk.f32.vlgmr.msrb.gmra.mxu3 %vm1118_vm5, %v1106_v55 }
 0x321   :  { %2159 = vrcp.f32 %v1061_v45  ;;  %v506_v11 = vrot.slane %v479_v6, 4 }
 0x325   :  { %v2158_v59 = vpop.eup %2157 }
 0x326   :  { %v1107_v29 = vmul.f32 %v2158_v59, %v2638_v56  ;;  %v1070_v1 = vpop.xlane.xlu0 %1069  ;;  %v475_v56 = vperm.slane %v469_v3, %v2355_v17 }
 0x327   :  { %v2160_v18 = vpop.eup %2159  ;;  %2161 = vrcp.f32 %v1070_v1 }
 0x328   :  { %v1109_v30 = vmul.f32 %v2160_v18, %v2641_v61  ;;  %2009 = vmatmul.msk.f32.vlgmr.msra.gmra.mxu0 %vm1118_vm5, %v1107_v29  ;;  %v494_v4 = vrot.slane %v475_v56, 4 }
 0x32a   :  { %2013 = vmatmul.msk.f32.vlgmr.msrb.gmra.mxu2 %vm1118_vm5, %v1109_v30 }
 0x32d   :  { %v2162_v5 = vpop.eup %2161 }
 0x32e   :  { %v1112_v25 = vmul.f32 %v2162_v5, %v2649_v0  ;;  %v1085_v40 = vpop.xlane.xlu0 %1084 }
 0x336   :  { %v1079_v44 = vpop.xlane.xlu0 %1078 }
 0x338   :  { %v403_v61 = vpop.permute.xlu1 %402 }
 0x339   :  { %v480_v10 = vrot.slane %v403_v61, 4  ;;  %v483_v53 = vsel %vm124_vm1, %v403_v61, %v482_v8 }
 0x33a   :  { %v491_v12 = vperm.slane %v483_v53, %v2355_v17 }
 0x33b   :  { %v481_v13 = vsel %vm124_vm1, %v480_v10, %v395_v2 }
 0x33c   :  { %v487_v14 = vperm.slane %v481_v13, %v2355_v17  ;;  %v504_v35 = vrot.slane %v491_v12, 4  ;;  %v507_v19 = vsel %vm124_vm1, %v491_v12, %v506_v11 }
 0x33d   :  { %v515_v32 = vperm.slane %v507_v19, %v2392_v46 }
 0x33e   :  { %v492_v48 = vrot.slane %v487_v14, 4  ;;  %v495_v20 = vsel %vm124_vm1, %v487_v14, %v494_v4  ;;  %v505_v22 = vsel %vm124_vm1, %v504_v35, %v479_v6 }
 0x33f   :  { %v511_v58 = vperm.slane %v505_v22, %v2392_v46  ;;  %v503_v24 = vperm.slane %v495_v20, %v2392_v46  ;;  %v522_v28 = vrot.slane %v515_v32, 4 }
 0x340   :  { %v493_v27 = vsel %vm124_vm1, %v492_v48, %v475_v56 }
 0x341   :  { %2018 = vmatpush.msk.msra.mxu1 %vm1122_vm3, %v503_v24  ;;  %v499_v31 = vperm.slane %v493_v27, %v2392_v46  ;;  %v518_v33 = vrot.slane %v503_v24, 4  ;;  %v520_v47 = vrot.slane %v511_v58, 4  ;;  %v523_v0 = vsel %vm124_vm1, 0.0, %v522_v28 }
 0x342   :  { %2019 = vmatmul.msk.f32.vlgmr.msra.gmra.mxu1 %vm1118_vm5, %v1112_v25 }
 0x343   :  { %2026 = vmatpush.msk.msrb.mxu1 %vm1122_vm3, %v515_v32  ;;  %2014 = vmatpush.msk.msra.mxu3 %vm1122_vm3, %v499_v31  ;;  %v519_v63 = vsel %vm124_vm1, 0.0, %v518_v33  ;;  %v516_v34 = vrot.slane %v499_v31, 4  ;;  %v521_v37 = vsel %vm124_vm1, 0.0, %v520_v47 }
 0x344   :  { %2020 = vmatpush.msk.msra.mxu2 %vm1122_vm3, %v519_v63 }
 0x345   :  { %2022 = vmatpush.msk.msrb.mxu3 %vm1122_vm3, %v511_v58  ;;  %v517_v36 = vsel %vm124_vm1, 0.0, %v516_v34 }
 0x346   :  { %2028 = vmatpush.msk.msrb.mxu2 %vm1122_vm3, %v523_v0  ;;  %2016 = vmatpush.msk.msrb.mxu0 %vm1122_vm3, %v517_v36 }
 0x348   :  { %2024 = vmatpush.msk.msra.mxu0 %vm1122_vm3, %v521_v37 }
 0x349   :  { %v1073_v39 = vpop.xlane.xlu2 %1072 }
 0x34a   :  { %2163 = vrcp.f32 %v1073_v39 }
 0x34b   :  { %2165 = vrcp.f32 %v1085_v40 }
 0x350   :  { %v2164_v41 = vpop.eup %2163 }
 0x351   :  { %v1113_v42 = vmul.f32 %v2164_v41, %v2666_v15  ;;  %v1067_v43 = vpop.xlane.xlu2 %1066  ;;  %v2166_v51 = vpop.eup %2165 }
 0x352   :  { %2167 = vrcp.f32 %v1067_v43  ;;  %v1117_v54 = vmul.f32 %v2166_v51, %v2654_v7 }
 0x353   :  { %2021 = vmatmul.msk.f32.vlgmr.msra.gmra.mxu2 %vm1118_vm5, %v1113_v42  ;;  %2169 = vrcp.f32 %v1079_v44 }
 0x358   :  { %v2168_v16 = vpop.eup %2167 }
 0x359   :  { %v1111_v21 = vmul.f32 %v2168_v16, %v2671_v60  ;;  %v1082_v23 = vpop.xlane.xlu2 %1081  ;;  %v2170_v55 = vpop.eup %2169 }
 0x35a   :  { %2171 = vrcp.f32 %v1082_v23  ;;  %v1115_v50 = vmul.f32 %v2170_v55, %v2658_v38 }
 0x35b   :  { %2017 = vmatmul.msk.f32.vlgmr.msrb.gmra.mxu0 %vm1118_vm5, %v1111_v21  ;;  %2029 = vmatmul.msk.f32.vlgmr.msrb.gmra.mxu2 %vm1118_vm5, %v1117_v54 }
 0x360   :  { %v2172_v15 = vpop.eup %2171 }
 0x361   :  { %v1116_v45 = vmul.f32 %v2172_v15, %v2676_v9 }
 0x363   :  { %v1064_v59 = vpop.xlane.xlu1 %1063  ;;  %2025 = vmatmul.msk.f32.vlgmr.msra.gmra.mxu0 %vm1118_vm5, %v1115_v50  ;;  %2027 = vmatmul.msk.f32.vlgmr.msrb.gmra.mxu1 %vm1118_vm5, %v1116_v45 }
 0x364   :  { %2173 = vrcp.f32 %v1064_v59 }
 0x36a   :  { %v2174_v7 = vpop.eup %2173 }
 0x36b   :  { %v1110_v60 = vmul.f32 %v2174_v7, %v2681_v26  ;;  %v1076_v18 = vpop.xlane.xlu1 %1075 }
 0x36c   :  { %2175 = vrcp.f32 %v1076_v18 }
 0x36d   :  { %2015 = vmatmul.msk.f32.vlgmr.msra.gmra.mxu3 %vm1118_vm5, %v1110_v60 }
 0x372   :  { %v2176_v29 = vpop.eup %2175 }
 0x373   :  { %v1114_v30 = vmul.f32 %v2176_v29, %v2685_v57 }
 0x375   :  { %2023 = vmatmul.msk.f32.vlgmr.msrb.gmra.mxu3 %vm1118_vm5, %v1114_v30 }
 0x386   :  { %v1195_v38 = vpop.f32.mrf.mxu1 }
 0x387   :  { %v1536_v8 = vrot.slane %v1195_v38, 4 }
 0x389   :  { %v1221_v9 = vpop.f32.mrf.mxu2 }
 0x38a   :  { %v1542_v49 = vrot.slane %v1221_v9, 4 }
 0x38d   :  { %v1143_v52 = vpop.f32.mrf.mxu3 }
 0x38e   :  { %v1537_v57 = vsel %vm124_vm1, %v1536_v8, %v1143_v52 }
 0x38f   :  { %v1299_v1 = vpop.f32.mrf.mxu1  ;;  %v1541_v4 = vperm.slane %v1537_v57, %v2355_v17 }
 0x390   :  { %v1169_v62 = vpop.f32.mrf.mxu0  ;;  %v1548_v56 = vrot.slane %v1299_v1, 4 }
 0x391   :  { %v1543_v2 = vsel %vm124_vm1, %v1542_v49, %v1169_v62  ;;  %v1562_v39 = vrot.slane %v1541_v4, 4 }
 0x392   :  { %v1547_v3 = vperm.slane %v1543_v2, %v2355_v17 }
 0x394   :  { %v1560_v12 = vrot.slane %v1547_v3, 4  ;;  %v1563_v54 = vsel %vm124_vm1, %v1547_v3, %v1562_v39 }
 0x395   :  { %v1571_v59 = vperm.slane %v1563_v54, %v2392_v46 }
 0x396   :  { %v1561_v19 = vsel %vm124_vm1, %v1560_v12, %v1541_v4  ;;  %v2068_v4 = vld [vmem:[%s2871_s3 + $0x8] sm:$0xff] }
 0x397   :  { %v1567_v48 = vperm.slane %v1561_v19, %v2392_v46  ;;  %v1590_v1 = vrot.slane %v1571_v59, 4  ;;  %1710 = vmatpush.bf16.msra.mxu3 %v2068_v4 }
 0x399   :  { %v1586_v9 = vrot.slane %v1567_v48, 4 }
 0x3a3   :  { %v1247_v26 = vpop.f32.mrf.mxu3 }
 0x3a4   :  { %v1549_v53 = vsel %vm124_vm1, %v1548_v56, %v1247_v26 }
 0x3a5   :  { %v1273_v10 = vpop.f32.mrf.mxu0  ;;  %v1553_v14 = vperm.slane %v1549_v53, %v2355_v17 }
 0x3a7   :  { %v1574_v44 = vrot.slane %v1553_v14, 4 }
 0x3ad   :  { %v1325_v6 = vpop.f32.mrf.mxu2 }
 0x3ae   :  { %v1554_v61 = vrot.slane %v1325_v6, 4 }
 0x3b0   :  { %v1555_v11 = vsel %vm124_vm1, %v1554_v61, %v1273_v10 }
 0x3b1   :  { %v1559_v13 = vperm.slane %v1555_v11, %v2355_v17 }
 0x3b3   :  { %v1572_v35 = vrot.slane %v1559_v13, 4  ;;  %v1575_v23 = vsel %vm124_vm1, %v1559_v13, %v1574_v44 }
 0x3b4   :  { %v1583_v18 = vperm.slane %v1575_v23, %v2392_v46 }
 0x3b5   :  { %v1573_v5 = vsel %vm124_vm1, %v1572_v35, %v1553_v14  ;;  %v2067_v14 = vld [vmem:[%s2871_s3] sm:$0xff]  ;;  %s1944_s3 = sshll.u32 %s2881_s13, 4  ;;  %s1945_s3 = int_to_ptr.hbm [resolvable:$true] %s1944_s3 }
 0x3b6   :  { %v1579_v32 = vperm.slane %v1573_v5, %v2392_v46  ;;  %v1588_v3 = vrot.slane %v1583_v18, 4  ;;  %v1591_v61 = vsel %vm124_vm1, %v1583_v18, %v1590_v1  ;;  %1711 = vmatpush.bf16.msra.mxu3 %v2067_v14  ;;  %v2070_v1 = vld [vmem:[#allocation2 + $0x8] sm:$0xff] }
 0x3b7   :  { %1813 = vmatpush.bf16.msrb.mxu0 %v2070_v1 }
 0x3b8   :  { %v1584_v20 = vrot.slane %v1579_v32, 4  ;;  %v1587_v2 = vsel %vm124_vm1, %v1579_v32, %v1586_v9  ;;  %v1589_v12 = vsel %vm124_vm1, %v1588_v3, %v1571_v59  ;;  %v2069_v3 = vld [vmem:[#allocation2] sm:$0xff] }
 0x3ba   :  { %v2764_v22 = vsel %vm124_vm1, %v1584_v20, %v1567_v48 }
 0x3bb   :  { %1814 = vmatpush.bf16.msrb.mxu0 %v2069_v3 }
 0x3bf   :  { %v1403_v27 = vpop.f32.mrf.mxu1 }
 0x3c0   :  { %v1592_v33 = vrot.slane %v1403_v27, 4 }
 0x3d6   :  { %v1429_v58 = vpop.f32.mrf.mxu2 }
 0x3d7   :  { %v1598_v25 = vrot.slane %v1429_v58, 4 }
 0x3d8   :  { %v1377_v24 = vpop.f32.mrf.mxu0 }
 0x3d9   :  { %v1599_v31 = vsel %vm124_vm1, %v1598_v25, %v1377_v24 }
 0x3da   :  { %v1603_v63 = vperm.slane %v1599_v31, %v2355_v17 }
 0x3dc   :  { %v1616_v41 = vrot.slane %v1603_v63, 4 }
 0x3de   :  { %v1533_v28 = vpop.f32.mrf.mxu2 }
 0x3df   :  { %v1610_v47 = vrot.slane %v1533_v28, 4 }
 0x3e0   :  { %v1481_v34 = vpop.f32.mrf.mxu0  ;;  %v1507_v42 = vpop.f32.mrf.mxu1 }
 0x3e1   :  { %v1611_v40 = vsel %vm124_vm1, %v1610_v47, %v1481_v34  ;;  %v1604_v21 = vrot.slane %v1507_v42, 4 }
 0x3e2   :  { %v1615_v51 = vperm.slane %v1611_v40, %v2355_v17 }
 0x3e4   :  { %v1628_v7 = vrot.slane %v1615_v51, 4 }
 0x3f0   :  { %v1351_v0 = vpop.f32.mrf.mxu3 }
 0x3f1   :  { %v1593_v36 = vsel %vm124_vm1, %v1592_v33, %v1351_v0  ;;  %v2106_v0 = vld [vmem:[%s2872_s4] ss:$0 sm:$0xff] }
 0x3f2   :  { %v1597_v37 = vperm.slane %v1593_v36, %v2355_v17 }
 0x3f4   :  { %v1618_v43 = vrot.slane %v1597_v37, 4  ;;  %v1617_v16 = vsel %vm124_vm1, %v1616_v41, %v1597_v37 }
 0x3f5   :  { %v1623_v50 = vperm.slane %v1617_v16, %v2392_v46  ;;  %v2253_v16 = vmov 32.0  }
 0x3f6   :  { %v1619_v55 = vsel %vm124_vm1, %v1603_v63, %v1618_v43  ;;  %v2188_v43 = vld [vmem:[%s2868_s0 + $0x8] sm:$0xff]  ;;  %2177 = vrcp.f32 %v2253_v16 }
 0x3f7   :  { %v1627_v29 = vperm.slane %v1619_v55, %v2392_v46  ;;  %v1642_v62 = vrot.slane %v1623_v50, 4 }
 0x3f8   :  { %v1455_v15 = vpop.f32.mrf.mxu3 }
 0x3f9   :  { %v1605_v45 = vsel %vm124_vm1, %v1604_v21, %v1455_v15  ;;  %v1646_v8 = vrot.slane %v1627_v29, 4 }
 0x3fa   :  { %v1609_v60 = vperm.slane %v1605_v45, %v2355_v17 }
 0x3fc   :  { %v1629_v30 = vsel %vm124_vm1, %v1628_v7, %v1609_v60  ;;  %v1630_v38 = vrot.slane %v1609_v60, 4  ;;  %v2178_v54 = vpop.eup %2177 }
 0x3fd   :  { %v1635_v52 = vperm.slane %v1629_v30, %v2392_v46  ;;  %v1727_v21 = vmul.f32 32.0, %v2178_v54  ;;  %vm1731_vm8 = vweird.f32 %v2178_v54 }
 0x3fe   :  { %v1631_v49 = vsel %vm124_vm1, %v1615_v51, %v1630_v38 }
 0x3ff   :  { %v1640_v26 = vrot.slane %v1635_v52, 4  ;;  %v1643_v17 = vsel %vm124_vm1, %v1635_v52, %v1642_v62  ;;  %v1639_v6 = vperm.slane %v1631_v49, %v2392_v46  ;;  %v1728_v23 = vsub.f32 1.0, %v1727_v21 }
 0x400   :  { %v2090_v56 = vpack.i.bf16 %v1643_v17, %v1587_v2 }
 0x401   :  { %v1647_v10 = vsel %vm124_vm1, %v1639_v6, %v1646_v8  ;;  %v1644_v57 = vrot.slane %v1639_v6, 4  ;;  %v1641_v53 = vsel %vm124_vm1, %v1640_v26, %v1623_v50  ;;  %v1729_v55 = vmul.f32 %v2178_v54, %v1728_v23 }
 0x402   :  { %2091 = vrot.lane.b32.xlu1 %v2090_v56, %s2250_s26  ;;  %v2100_v11 = vpack.i.bf16 %v1647_v10, %v1591_v61 }
 0x403   :  { %v1645_v13 = vsel %vm124_vm1, %v1644_v57, %v1627_v29  ;;  %v1730_v15 = vadd.f32 %v2178_v54, %v1729_v55 }
 0x404   :  { %2101 = vrot.lane.b32.xlu0 %v2100_v11, %s2251_s27  ;;  %v2095_v46 = vpack.i.bf16 %v1645_v13, %v1589_v12 }
 0x405   :  { %v2815_v50 = vsel %vm1731_vm8, %v2178_v54, %v1730_v15 }
 0x406   :  { %2096 = vrot.lane.b32.xlu2 %v2095_v46, %s2252_s28 }
 0x460   :  { %v2097_v35 = vpop.permute.xlu2 %2096 }
 0x461   :  { %v2099_v48 = vunpack.i.h.bf16 %v2097_v35  ;;  %v2098_v20 = vunpack.i.l.bf16 %v2097_v35  ;;  %v2107_v35 = vld [vmem:[%s2873_s5] ss:$0 sm:$0xff] }
 0x474   :  { %v2092_v19 = vpop.permute.xlu1 %2091 }
 0x475   :  { %v2094_v5 = vunpack.i.h.bf16 %v2092_v19  ;;  %v2093_v32 = vunpack.i.l.bf16 %v2092_v19 }
 0x476   :  { %v2102_v58 = vpop.permute.xlu0 %2101 }
 0x477   :  { %v1672_v24 = vsel %vm524_vm2, %v2764_v22, %v2093_v32  ;;  %v1673_v25 = vsel %vm524_vm2, %v1641_v53, %v2094_v5  ;;  %v2104_v27 = vunpack.i.h.bf16 %v2102_v58  ;;  %v2103_v28 = vunpack.i.l.bf16 %v2102_v58  ;;  %v2187_v22 = vld [vmem:[%s2868_s0] sm:$0xff] }
 0x478   :  { %v1675_v31 = vsel %vm1674_vm6, %v1672_v24, %v2098_v20  ;;  %v1676_v33 = vsel %vm1674_vm6, %v1673_v25, %v2099_v48  ;;  %v2108_v48 = vld [vmem:[%s2874_s6] ss:$0 sm:$0xff] }
 0x479   :  { %v1678_v47 = vsel %vm1677_vm7, %v1675_v31, %v2103_v28  ;;  %v1679_v63 = vsel %vm1677_vm7, %v1676_v33, %v2104_v27  ;;  %v2074_v31 = vld [vmem:[%s2877_s9 + $0x18] sm:$0xff]  ;;  %v2073_v33 = vld [vmem:[%s2877_s9 + $0x10] sm:$0xff] }
 0x47a   :  { %v1680_v34 = vpack.c.bf16 %v1679_v63, %v1678_v47  ;;  %1868 = vmatpush.bf16.msra.mxu1 %v2074_v31  ;;  %v2072_v47 = vld [vmem:[%s2877_s9 + $0x8] sm:$0xff]  ;;  %v2071_v63 = vld [vmem:[%s2877_s9] sm:$0xff] }
 0x47c   :  { %2038 = vmatmul.msk.bf16.vlgmr.msra.gmra.mxu3 %vm85_vm0, %v1680_v34 }
 0x47e   :  { %1869 = vmatpush.bf16.msra.mxu1 %v2073_v33 }
 0x482   :  { %1870 = vmatpush.bf16.msra.mxu1 %v2072_v47 }
 0x486   :  { %1871 = vmatpush.bf16.msra.mxu1 %v2071_v63 }
 0x4ff   :  { %v1713_v36 = vpop.f32.mrf.mxu3 }
 0x500   :  { %v1714_v37 = vadd.f32 %v2106_v0, %v1713_v36 }
 0x502   :  { %v1718_v39 = vadd.f32 %v2187_v22, %v1714_v37 }
 0x504   :  { %v1720_v40 = vsel %vm85_vm0, %v1718_v39, 0.0 }
 0x505   :  { %1721 = vadd.xlane.f32.xlu1 %v1720_v40 }
 0x507   :  { %v1715_v41 = vpop.f32.mrf.mxu3 }
 0x508   :  { %v1716_v42 = vadd.f32 %v2106_v0, %v1715_v41  ;;  %v2109_v0 = vld [vmem:[%s2876_s8] ss:$0 sm:$0xff] }
 0x50a   :  { %v1719_v44 = vadd.f32 %v2188_v43, %v1716_v42  ;;  %v2110_v42 = vld [vmem:[%s2878_s10] ss:$0 sm:$0xff] }
 0x50c   :  { %v1723_v51 = vsel %vm85_vm0, %v1719_v44, 0.0 }
 0x50d   :  { %1724 = vadd.xlane.f32.xlu0 %v1723_v51 }
 0x578   :  { %v1722_v45 = vpop.xlane.xlu1 %1721 }
 0x579   :  { %v1733_v59 = vmul.f32 %v2815_v50, %v1722_v45 }
 0x57b   :  { %v1735_v7 = vsub.f32 %v1718_v39, %v1733_v59 }
 0x57d   :  { %v1737_v60 = vmul.f32 %v1735_v7, %v1735_v7 }
 0x57f   :  { %v1739_v18 = vsel %vm85_vm0, %v1737_v60, 0.0 }
 0x580   :  { %v1725_v29 = vpop.xlane.xlu0 %1724  ;;  %1740 = vadd.xlane.f32.xlu2 %v1739_v18 }
 0x581   :  { %v1734_v30 = vmul.f32 %v2815_v50, %v1725_v29 }
 0x583   :  { %v1736_v38 = vsub.f32 %v1719_v44, %v1734_v30 }
 0x585   :  { %v1738_v9 = vmul.f32 %v1736_v38, %v1736_v38 }
 0x587   :  { %v1742_v52 = vsel %vm85_vm0, %v1738_v9, 0.0 }
 0x588   :  { %1743 = vadd.xlane.f32.xlu1 %v1742_v52 }
 0x5f3   :  { %v1741_v62 = vpop.xlane.xlu2 %1740 }
 0x5f4   :  { %v1745_v49 = vmul.f32 %v1741_v62, %v2815_v50 }
 0x5f6   :  { %v1747_v2 = vadd.f32 1e-05, %v1745_v49 }
 0x5f8   :  { %2179 = vrsqrt.f32 %v1747_v2  ;;  %vm1755_vm10 = vweird.f32 %v1747_v2 }
 0x5fb   :  { %v1744_v26 = vpop.xlane.xlu1 %1743 }
 0x5fc   :  { %v1746_v17 = vmul.f32 %v1744_v26, %v2815_v50 }
 0x5fe   :  { %v2180_v6 = vpop.eup %2179  ;;  %v1748_v8 = vadd.f32 1e-05, %v1746_v17 }
 0x5ff   :  { %v1750_v56 = vmul.f32 %v2180_v6, %v1747_v2  ;;  %vm1756_vm9 = vweird.f32 %v2180_v6 }
 0x600   :  { %2181 = vrsqrt.f32 %v1748_v8  ;;  %vm1757_vm11 = vmor %vm1755_vm10, %vm1756_vm9  ;;  %vm1765_vm13 = vweird.f32 %v1748_v8 }
 0x601   :  { %v1751_v61 = vmul.f32 %v2180_v6, %v1750_v56 }
 0x603   :  { %v1752_v10 = vmul.f32 0.5, %v1751_v61 }
 0x605   :  { %v1753_v57 = vsub.f32 1.5, %v1752_v10 }
 0x606   :  { %v2182_v53 = vpop.eup %2181 }
 0x607   :  { %v1754_v11 = vmul.f32 %v2180_v6, %v1753_v57  ;;  %v1760_v12 = vmul.f32 %v2182_v53, %v1748_v8  ;;  %vm1766_vm12 = vweird.f32 %v2182_v53 }
 0x608   :  { %vm1767_vm14 = vmor %vm1765_vm13, %vm1766_vm12 }
 0x609   :  { %v1761_v13 = vmul.f32 %v2182_v53, %v1760_v12  ;;  %v1758_v46 = vsel %vm1757_vm11, %v2180_v6, %v1754_v11 }
 0x60a   :  { %v1769_v19 = vmul.f32 %v1758_v46, %v1735_v7 }
 0x60b   :  { %v1762_v4 = vmul.f32 0.5, %v1761_v13 }
 0x60c   :  { %v1775_v20 = vmul.f32 %v2107_v35, %v1769_v19 }
 0x60d   :  { %v1763_v14 = vsub.f32 1.5, %v1762_v4 }
 0x60e   :  { %v1781_v25 = vadd.f32 %v2108_v48, %v1775_v20 }
 0x60f   :  { %v1764_v5 = vmul.f32 %v2182_v53, %v1763_v14 }
 0x611   :  { %v1768_v32 = vsel %vm1767_vm14, %v2182_v53, %v1764_v5  ;;  %v2111_v53 = vld [vmem:[%s2879_s11] ss:$0 sm:$0xff] }
 0x612   :  { %v1770_v58 = vmul.f32 %v1768_v32, %v1736_v38 }
 0x614   :  { %v1776_v24 = vmul.f32 %v2107_v35, %v1770_v58 }
 0x616   :  { %v1782_v27 = vadd.f32 %v2108_v48, %v1776_v24 }
 0x618   :  { %v1783_v28 = vpack.c.bf16 %v1782_v27, %v1781_v25 }
 0x61a   :  { %2047 = vmatmul.msk.bf16.vlgmr.msrb.gmra.mxu0 %vm85_vm0, %v1783_v28 }
 0x697   :  { %v1816_v34 = vpop.f32.mrf.mxu0 }
 0x698   :  { %v1817_v36 = vadd.f32 %v2109_v0, %v1816_v34 }
 0x69a   :  { %v1821_v39 = vmax.f32 %v1817_v36, 0.0 }
 0x69f   :  { %v1818_v37 = vpop.f32.mrf.mxu0 }
 0x6a0   :  { %v1819_v22 = vadd.f32 %v2109_v0, %v1818_v37 }
 0x6a2   :  { %v1822_v40 = vmax.f32 %v1819_v22, 0.0 }
 0x6a4   :  { %v1823_v41 = vpack.c.bf16 %v1822_v40, %v1821_v39 }
 0x6a6   :  { %2064 = vmatmul.msk.bf16.vlgmr.msra.gmra.mxu1 %vm1860_vm15, %v1823_v41 }
 0x723   :  { %v1873_v43 = vpop.f32.mrf.mxu1 }
 0x724   :  { %v1874_v44 = vadd.f32 %v2110_v42, %v1873_v43 }
 0x726   :  { %v1878_v51 = vadd.f32 %v1874_v44, %v1781_v25 }
 0x728   :  { %v1880_v16 = vsel %vm85_vm0, %v1878_v51, 0.0 }
 0x729   :  { %1881 = vadd.xlane.f32.xlu0 %v1880_v16 }
 0x72b   :  { %v1875_v54 = vpop.f32.mrf.mxu1 }
 0x72c   :  { %v1876_v21 = vadd.f32 %v2110_v42, %v1875_v54 }
 0x72e   :  { %v1879_v23 = vadd.f32 %v1876_v21, %v1782_v27 }
 0x730   :  { %v1883_v55 = vsel %vm85_vm0, %v1879_v23, 0.0 }
 0x731   :  { %1884 = vadd.xlane.f32.xlu2 %v1883_v55 }
 0x79c   :  { %v1882_v15 = vpop.xlane.xlu0 %1881 }
 0x79d   :  { %v1886_v45 = vmul.f32 %v1882_v15, %v2815_v50 }
 0x79f   :  { %v1888_v59 = vsub.f32 %v1878_v51, %v1886_v45 }
 0x7a1   :  { %v1890_v7 = vmul.f32 %v1888_v59, %v1888_v59 }
 0x7a3   :  { %v1892_v60 = vsel %vm85_vm0, %v1890_v7, 0.0 }
 0x7a4   :  { %v1885_v18 = vpop.xlane.xlu2 %1884  ;;  %1893 = vadd.xlane.f32.xlu1 %v1892_v60 }
 0x7a5   :  { %v1887_v29 = vmul.f32 %v1885_v18, %v2815_v50 }
 0x7a7   :  { %v1889_v30 = vsub.f32 %v1879_v23, %v1887_v29 }
 0x7a9   :  { %v1891_v38 = vmul.f32 %v1889_v30, %v1889_v30 }
 0x7ab   :  { %v1895_v9 = vsel %vm85_vm0, %v1891_v38, 0.0 }
 0x7ac   :  { %1896 = vadd.xlane.f32.xlu0 %v1895_v9 }
 0x817   :  { %v1894_v52 = vpop.xlane.xlu1 %1893 }
 0x818   :  { %v1898_v62 = vmul.f32 %v1894_v52, %v2815_v50 }
 0x81a   :  { %v1900_v49 = vadd.f32 1e-05, %v1898_v62 }
 0x81c   :  { %2183 = vrsqrt.f32 %v1900_v49  ;;  %vm1908_vm2 = vweird.f32 %v1900_v49 }
 0x81f   :  { %v1897_v2 = vpop.xlane.xlu0 %1896 }
 0x820   :  { %v1899_v1 = vmul.f32 %v1897_v2, %v2815_v50  ;;  %v2112_v50 = vld [vmem:[%s2880_s12] ss:$0 sm:$0xff]  ;;  %s2255_s12 = smov 128  }
 0x822   :  { %v2184_v3 = vpop.eup %2183  ;;  %v1901_v26 = vadd.f32 1e-05, %v1899_v1 }
 0x823   :  { %v1903_v17 = vmul.f32 %v2184_v3, %v1900_v49  ;;  %vm1909_vm1 = vweird.f32 %v2184_v3 }
 0x824   :  { %2185 = vrsqrt.f32 %v1901_v26  ;;  %vm1910_vm3 = vmor %vm1908_vm2, %vm1909_vm1  ;;  %vm1918_vm5 = vweird.f32 %v1901_v26 }
 0x825   :  { %v1904_v6 = vmul.f32 %v2184_v3, %v1903_v17 }
 0x827   :  { %v1905_v8 = vmul.f32 0.5, %v1904_v6 }
 0x829   :  { %v1906_v56 = vsub.f32 1.5, %v1905_v8 }
 0x82a   :  { %v2186_v61 = vpop.eup %2185 }
 0x82b   :  { %v1907_v10 = vmul.f32 %v2184_v3, %v1906_v56  ;;  %v1913_v57 = vmul.f32 %v2186_v61, %v1901_v26  ;;  %vm1919_vm4 = vweird.f32 %v2186_v61 }
 0x82c   :  { %vm1920_vm6 = vmor %vm1918_vm5, %vm1919_vm4 }
 0x82d   :  { %v1911_v11 = vsel %vm1910_vm3, %v2184_v3, %v1907_v10  ;;  %v1914_v12 = vmul.f32 %v2186_v61, %v1913_v57 }
 0x82e   :  { %v1922_v13 = vmul.f32 %v1911_v11, %v1888_v59 }
 0x82f   :  { %v1915_v46 = vmul.f32 0.5, %v1914_v12 }
 0x830   :  { %v1928_v4 = vmul.f32 %v2111_v53, %v1922_v13 }
 0x831   :  { %v1916_v14 = vsub.f32 1.5, %v1915_v46 }
 0x832   :  { %v1934_v35 = vadd.f32 %v2112_v50, %v1928_v4 }
 0x833   :  { %v1917_v19 = vmul.f32 %v2186_v61, %v1916_v14 }
 0x834   :  { %1936 = vst.msk [vmem:[#allocation5] sm:$0xff] %vm85_vm0, %v1934_v35 }
 0x835   :  { %v1921_v5 = vsel %vm1920_vm6, %v2186_v61, %v1917_v19 }
 0x836   :  { %v1923_v32 = vmul.f32 %v1921_v5, %v1889_v30 }
 0x838   :  { %v1929_v48 = vmul.f32 %v2111_v53, %v1923_v32 }
 0x83a   :  { %v1935_v20 = vadd.f32 %v2112_v50, %v1929_v48 }
 0x83c   :  { %1937 = vst.msk [vmem:[#allocation5 + $0x8] sm:$0xff] %vm85_vm0, %v1935_v20 }
 0x83d   :  { %1950 = dma.vmem_to_hbm [thread:$0]  %s1943_s17, 256, %s1945_s3, [#allocation4], %s2255_s12, %s2255_s12, %s2250_s26  }
 0x83e   :  { %2239 = dma.done.wait [#allocation4], 256  }
 0x83f   :  { %2240 = vsyncadd [#allocation4], 4294967040 }
 0x840   :  { %1955 = vsyncpa [#allocation3], 1 }
 0x841   :  { %1956 = vsyncpa [#allocation4], 1 }

</bundles_post_ra>
